<compile_context>
chip_gen: v7x
topology: tpu7x:2x2x1
jax: 0.10.0
libtpu: 0.0.40
codegen_flags: <defaults>
</compile_context>

<pallas_src>
import numpy as np
import jax
import jax.numpy as jnp
from jax import lax
from jax.experimental import pallas as pl
from jax.experimental.pallas import tpu as pltpu


# ----------------------------- Pallas kernel ------------------------------- #

def _seqconv_fused_kernel(xpad_ref, w_ref, b_ref, o_ref):
    # xpad_ref: (1, H+2, W+2, Cin)   zero-padded input image (NHWC layout)
    # w_ref:    (9*Cin, Cout)        folded 3x3 weights, rows ordered (dh, dw, ci)
    # b_ref:    (1, Cout)            folded bias (float32)
    # o_ref:    (1, H, W, Cout)
    _, Hp, Wp, Cin = xpad_ref.shape
    H, W = Hp - 2, Wp - 2
    Cout = w_ref.shape[1]

    xp = xpad_ref[0]                                     # (H+2, W+2, Cin)

    # im2col: stack the 9 shifted windows along the contraction dim, then do a
    # single MXU matmul (instead of 9 tiny K=Cin matmuls).
    cols = []
    for dh in range(3):
        for dw in range(3):
            cols.append(xp[dh:dh + H, dw:dw + W, :].astype(jnp.float32))
    patches = jnp.concatenate(cols, axis=-1)             # (H, W, 9*Cin)
    lhs = patches.reshape(H * W, 9 * Cin).astype(w_ref.dtype)

    acc = jnp.dot(lhs, w_ref[...], preferred_element_type=jnp.float32)
    acc = acc + b_ref[...].astype(jnp.float32)           # (1, Cout) broadcast
    o_ref[0] = acc.reshape(H, W, Cout).astype(o_ref.dtype)


# ------------------------------- wrapper ----------------------------------- #

def _fold_params(k0, b0, k1, b1):
    """Exact ECB reparameterization: fold the 1x1 conv into the 3x3 conv."""
    k0m = k0[:, :, 0, 0].astype(jnp.float32)                       # (Cmid, Cin)
    k1f = k1.astype(jnp.float32)                                   # (Cout, Cmid, 3, 3)
    rk = jnp.einsum('omhw,mi->oihw', k1f, k0m)                     # (Cout, Cin, 3, 3)
    rb = b1.astype(jnp.float32) + jnp.einsum('omhw,m->o', k1f, b0.astype(jnp.float32))
    return rk, rb


def seqconv3x3_pallas(x_nchw, k0, b0, k1, b1, *, compute_dtype=jnp.float32):
    """x_nchw: (N, Cin, H, W); k0: (Cmid, Cin, 1, 1); k1: (Cout, Cmid, 3, 3)."""
    N, Cin, H, W = x_nchw.shape
    Cout = k1.shape[0]

    rk, rb = _fold_params(k0, b0, k1, b1)

    # Glue: NCHW -> NHWC and zero spatial pad by 1 (fuses into one XLA op).
    x_nhwc = jnp.transpose(x_nchw, (0, 2, 3, 1)).astype(compute_dtype)
    x_pad = jnp.pad(x_nhwc, ((0, 0), (1, 1), (1, 1), (0, 0)))

    # (Cout, Cin, 3, 3) -> (9*Cin, Cout) with (dh, dw, ci) row order (matches im2col).
    w = jnp.transpose(rk, (2, 3, 1, 0)).reshape(9 * Cin, Cout).astype(compute_dtype)
    b = rb.reshape(1, Cout).astype(jnp.float32)

    out_nhwc = pl.pallas_call(
        _seqconv_fused_kernel,
        out_shape=jax.ShapeDtypeStruct((N, H, W, Cout), compute_dtype),
        grid_spec=pltpu.PrefetchScalarGridSpec(
            num_scalar_prefetch=0,
            grid=(N,),
            in_specs=[
                pl.BlockSpec((1, H + 2, W + 2, Cin), lambda n: (n, 0, 0, 0)),
                pl.BlockSpec((9 * Cin, Cout), lambda n: (0, 0)),
                pl.BlockSpec((1, Cout), lambda n: (0, 0)),
            ],
            out_specs=pl.BlockSpec((1, H, W, Cout), lambda n: (n, 0, 0, 0)),
        ),
        compiler_params=pltpu.CompilerParams(
            dimension_semantics=("parallel",),
            vmem_limit_bytes=64 * 1024 * 1024,
        ),
    )(x_pad, w, b)

    return jnp.transpose(out_nhwc, (0, 3, 1, 2))       # back to NCHW


def seqconv3x3_forward(seq_type, x_nchw, p, *, compute_dtype=jnp.float32):
    if seq_type == 'conv1x1-conv3x3':
        return seqconv3x3_pallas(x_nchw, p['k0'], p['b0'], p['k1'], p['b1'],
                                 compute_dtype=compute_dtype)
    # sobelx / sobely / laplacian: the depthwise (groups=Cout) 3x3 conv is
    # expressed as a block-diagonal full 3x3 conv, then folded like the rest.
    Cout = p['k0'].shape[0]
    dwk = (p['scale'] * p['mask'])[:, 0]                            # (Cout, 3, 3)
    k1_full = jnp.zeros((Cout, Cout, 3, 3), jnp.float32)
    k1_full = k1_full.at[jnp.arange(Cout), jnp.arange(Cout)].set(dwk)
    return seqconv3x3_pallas(x_nchw, p['k0'], p['b0'], k1_full, p['bias'],
                             compute_dtype=compute_dtype)


# ----------------------- parameter construction (glue) --------------------- #

def make_params(seq_type, inp_planes, out_planes, depth_multiplier, key):
    ks = jax.random.split(key, 6)
    if seq_type == 'conv1x1-conv3x3':
        mid = int(out_planes * depth_multiplier)
        k0 = jax.random.normal(ks[0], (mid, inp_planes, 1, 1), jnp.float32) * 0.1
        b0 = jax.random.normal(ks[1], (mid,), jnp.float32) * 0.1
        k1 = jax.random.normal(ks[2], (out_planes, mid, 3, 3), jnp.float32) * 0.1
        b1 = jax.random.normal(ks[3], (out_planes,), jnp.float32) * 0.1
        return dict(k0=k0, b0=b0, k1=k1, b1=b1)

    k0 = jax.random.normal(ks[0], (out_planes, inp_planes, 1, 1), jnp.float32) * 0.1
    b0 = jax.random.normal(ks[1], (out_planes,), jnp.float32) * 0.1
    scale = jax.random.normal(ks[2], (out_planes, 1, 1, 1), jnp.float32) * 1e-3
    bias = jax.random.normal(ks[3], (out_planes,), jnp.float32) * 1e-3

    mask = jnp.zeros((out_planes, 1, 3, 3), jnp.float32)
    if seq_type == 'conv1x1-sobelx':
        mask = mask.at[:, 0, 0, 0].set(1.0).at[:, 0, 1, 0].set(2.0).at[:, 0, 2, 0].set(1.0)
        mask = mask.at[:, 0, 0, 2].set(-1.0).at[:, 0, 1, 2].set(-2.0).at[:, 0, 2, 2].set(-1.0)
    elif seq_type == 'conv1x1-sobely':
        mask = mask.at[:, 0, 0, 0].set(1.0).at[:, 0, 0, 1].set(2.0).at[:, 0, 0, 2].set(1.0)
        mask = mask.at[:, 0, 2, 0].set(-1.0).at[:, 0, 2, 1].set(-2.0).at[:, 0, 2, 2].set(-1.0)
    elif seq_type == 'conv1x1-laplacian':
        mask = mask.at[:, 0, 0, 1].set(1.0).at[:, 0, 1, 0].set(1.0)
        mask = mask.at[:, 0, 1, 2].set(1.0).at[:, 0, 2, 1].set(1.0)
        mask = mask.at[:, 0, 1, 1].set(-4.0)
    else:
        raise ValueError('the type of seqconv is not supported!')
    return dict(k0=k0, b0=b0, scale=scale, bias=bias, mask=mask)


# ------------------------- pure-JAX reference ------------------------------ #

def _conv(x, w, groups=1):
    return lax.conv_general_dilated(
        x, w, (1, 1), 'VALID',
        dimension_numbers=('NCHW', 'OIHW', 'NCHW'),
        feature_group_count=groups)


def seqconv3x3_ref(seq_type, x, p):
    """Faithful two-stage reference of the original torch forward()."""
    k0, b0 = p['k0'], p['b0']
    y0 = _conv(x, k0) + b0[None, :, None, None]
    y0 = jnp.pad(y0, ((0, 0), (0, 0), (1, 1), (1, 1)))
    bpad = b0[None, :, None, None]
    y0 = y0.at[:, :, 0:1, :].set(bpad)
    y0 = y0.at[:, :, -1:, :].set(bpad)
    y0 = y0.at[:, :, :, 0:1].set(bpad)
    y0 = y0.at[:, :, :, -1:].set(bpad)
    if seq_type == 'conv1x1-conv3x3':
        return _conv(y0, p['k1']) + p['b1'][None, :, None, None]
    Cout = k0.shape[0]
    w = p['scale'] * p['mask']
    return _conv(y0, w, groups=Cout) + p['bias'][None, :, None, None]


# ----------------------------------- main ----------------------------------- #

if __name__ == "__main__":
    key = jax.random.PRNGKey(0)
    kx, kp1, kp2 = jax.random.split(key, 3)

    N, Cin, H, W = 2, 4, 16, 16
    Cout = 8
    x = jax.random.normal(kx, (N, Cin, H, W), jnp.float32)

    # Case 1: conv1x1-conv3x3 (depth_multiplier = 2 -> mid = 16), float32.
    p1 = make_params('conv1x1-conv3x3', Cin, Cout, 2, kp1)
    out1 = jax.block_until_ready(seqconv3x3_forward('conv1x1-conv3x3', x, p1))
    ref1 = seqconv3x3_ref('conv1x1-conv3x3', x, p1)
    np.testing.assert_allclose(np.asarray(out1), np.asarray(ref1), rtol=1e-4, atol=1e-4)

    # Case 2: conv1x1-sobelx (depthwise 3x3 via block-diagonal fold), float32.
    p2 = make_params('conv1x1-sobelx', Cin, Cout, 1, kp2)
    out2 = jax.block_until_ready(seqconv3x3_forward('conv1x1-sobelx', x, p2))
    ref2 = seqconv3x3_ref('conv1x1-sobelx', x, p2)
    np.testing.assert_allclose(np.asarray(out2), np.asarray(ref2), rtol=1e-4, atol=1e-5)

    # Case 3: bf16 storage / bf16-MXU path (v6e feedback), loose tolerance vs f32 ref.
    out3 = jax.block_until_ready(
        seqconv3x3_forward('conv1x1-conv3x3', x, p1, compute_dtype=jnp.bfloat16))
    np.testing.assert_allclose(np.asarray(out3.astype(jnp.float32)),
                               np.asarray(ref1), rtol=5e-2, atol=5e-2)

    assert out1.shape == (N, Cout, H, W) and out2.shape == (N, Cout, H, W)
    print("KERNEL_OK")
</pallas_src>

<mosaic_0001>
module attributes {stable_mosaic.version = 11 : i64} {
  func.func @_seqconv_fused_kernel(%arg0: i32, %arg1: memref<1x18x18x4xf32, #tpu.memory_space<vmem>>, %arg2: memref<36x8xf32, #tpu.memory_space<vmem>>, %arg3: memref<1x8xf32, #tpu.memory_space<vmem>>, %arg4: memref<1x16x16x8xf32, #tpu.memory_space<vmem>>) attributes {dimension_semantics = [#tpu.dimension_semantics<parallel>], iteration_bounds = array<i64: 2>, scalar_prefetch = 0 : i64, scratch_operands = 0 : i64, tpu.core_type = #tpu.core_type<tc>, window_params = [{transform_indices = @transform_0, window_bounds = array<i64: 1, 18, 18, 4>}, {pipeline_mode = #tpu.pipeline_mode<synchronous>, transform_indices = @transform_1, window_bounds = array<i64: 36, 8>}, {pipeline_mode = #tpu.pipeline_mode<synchronous>, transform_indices = @transform_2, window_bounds = array<i64: 1, 8>}, {transform_indices = @transform_3, window_bounds = array<i64: 1, 16, 16, 8>}]} {
    %c0 = arith.constant 0 : index
    %c0_0 = arith.constant 0 : index
    %c0_1 = arith.constant 0 : index
    %c0_2 = arith.constant 0 : index
    %0 = vector.load %arg1[%c0, %c0_0, %c0_1, %c0_2] : memref<1x18x18x4xf32, #tpu.memory_space<vmem>>, vector<1x18x18x4xf32>
    %1 = vector.shape_cast %0 : vector<1x18x18x4xf32> to vector<18x18x4xf32>
    %2 = vector.extract_strided_slice %1 {offsets = [0, 0, 0], sizes = [16, 16, 4], strides = [1, 1, 1]} : vector<18x18x4xf32> to vector<16x16x4xf32>
    %3 = vector.extract_strided_slice %1 {offsets = [0, 1, 0], sizes = [16, 16, 4], strides = [1, 1, 1]} : vector<18x18x4xf32> to vector<16x16x4xf32>
    %4 = vector.extract_strided_slice %1 {offsets = [0, 2, 0], sizes = [16, 16, 4], strides = [1, 1, 1]} : vector<18x18x4xf32> to vector<16x16x4xf32>
    %5 = vector.extract_strided_slice %1 {offsets = [1, 0, 0], sizes = [16, 16, 4], strides = [1, 1, 1]} : vector<18x18x4xf32> to vector<16x16x4xf32>
    %6 = vector.extract_strided_slice %1 {offsets = [1, 1, 0], sizes = [16, 16, 4], strides = [1, 1, 1]} : vector<18x18x4xf32> to vector<16x16x4xf32>
    %7 = vector.extract_strided_slice %1 {offsets = [1, 2, 0], sizes = [16, 16, 4], strides = [1, 1, 1]} : vector<18x18x4xf32> to vector<16x16x4xf32>
    %8 = vector.extract_strided_slice %1 {offsets = [2, 0, 0], sizes = [16, 16, 4], strides = [1, 1, 1]} : vector<18x18x4xf32> to vector<16x16x4xf32>
    %9 = vector.extract_strided_slice %1 {offsets = [2, 1, 0], sizes = [16, 16, 4], strides = [1, 1, 1]} : vector<18x18x4xf32> to vector<16x16x4xf32>
    %10 = vector.extract_strided_slice %1 {offsets = [2, 2, 0], sizes = [16, 16, 4], strides = [1, 1, 1]} : vector<18x18x4xf32> to vector<16x16x4xf32>
    %11 = tpu.concatenate %2, %3, %4, %5, %6, %7, %8, %9, %10 in 2 : vector<16x16x4xf32>, vector<16x16x4xf32>, vector<16x16x4xf32>, vector<16x16x4xf32>, vector<16x16x4xf32>, vector<16x16x4xf32>, vector<16x16x4xf32>, vector<16x16x4xf32>, vector<16x16x4xf32> -> vector<16x16x36xf32>
    %12 = vector.shape_cast %11 : vector<16x16x36xf32> to vector<256x36xf32>
    %c0_3 = arith.constant 0 : index
    %c0_4 = arith.constant 0 : index
    %13 = vector.load %arg2[%c0_3, %c0_4] : memref<36x8xf32, #tpu.memory_space<vmem>>, vector<36x8xf32>
    %cst = arith.constant dense<0.000000e+00> : vector<256x8xf32>
    %14 = tpu.matmul %12, %13, %cst {dimension_numbers = #tpu.dot_dimension_numbers<[1], [0], [0], [1], [0, 0, 1, 1], [], []>} : vector<256x36xf32>, vector<36x8xf32>, vector<256x8xf32> -> vector<256x8xf32>
    %c0_5 = arith.constant 0 : index
    %c0_6 = arith.constant 0 : index
    %15 = vector.load %arg3[%c0_5, %c0_6] : memref<1x8xf32, #tpu.memory_space<vmem>>, vector<1x8xf32>
    %16 = vector.broadcast %15 : vector<1x8xf32> to vector<256x8xf32>
    %17 = arith.addf %14, %16 : vector<256x8xf32>
    %18 = vector.shape_cast %17 : vector<256x8xf32> to vector<16x16x8xf32>
    %c0_7 = arith.constant 0 : index
    %c0_8 = arith.constant 0 : index
    %c0_9 = arith.constant 0 : index
    %c0_10 = arith.constant 0 : index
    %19 = vector.load %arg4[%c0_7, %c0_8, %c0_9, %c0_10] : memref<1x16x16x8xf32, #tpu.memory_space<vmem>>, vector<1x16x16x8xf32>
    %20 = vector.shape_cast %19 : vector<1x16x16x8xf32> to vector<16x16x8xf32>
    %21 = vector.shape_cast %18 : vector<16x16x8xf32> to vector<1x16x16x8xf32>
    tpu.vector_store %arg4[%c0_7, %c0_8, %c0_9, %c0_10], %21 {strides = array<i32>} : memref<1x16x16x8xf32, #tpu.memory_space<vmem>>, vector<1x16x16x8xf32>,
    return
  }
  func.func @transform_0(%arg0: i32) -> (i32, i32, i32, i32) {
    %c0_i32 = arith.constant 0 : i32
    %c0_i32_0 = arith.constant 0 : i32
    %c0_i32_1 = arith.constant 0 : i32
    %c0_i32_2 = arith.constant 0 : i32
    return %arg0, %c0_i32, %c0_i32_0, %c0_i32_1 : i32, i32, i32, i32
  }
  func.func @transform_1(%arg0: i32) -> (i32, i32) {
    %c0_i32 = arith.constant 0 : i32
    %c0_i32_0 = arith.constant 0 : i32
    %c0_i32_1 = arith.constant 0 : i32
    return %c0_i32, %c0_i32_0 : i32, i32
  }
  func.func @transform_2(%arg0: i32) -> (i32, i32) {
    %c0_i32 = arith.constant 0 : i32
    %c0_i32_0 = arith.constant 0 : i32
    %c0_i32_1 = arith.constant 0 : i32
    return %c0_i32, %c0_i32_0 : i32, i32
  }
  func.func @transform_3(%arg0: i32) -> (i32, i32, i32, i32) {
    %c0_i32 = arith.constant 0 : i32
    %c0_i32_0 = arith.constant 0 : i32
    %c0_i32_1 = arith.constant 0 : i32
    %c0_i32_2 = arith.constant 0 : i32
    return %arg0, %c0_i32, %c0_i32_0, %c0_i32_1 : i32, i32, i32, i32
  }
}

</mosaic_0001>

<bundles_post_ra>
// kernel: tpu_custom_call.1
= control target key start
LH: loop header
LB: loop body
LE: loop exit
PB: predicated region body
PF: predicated region fallthrough
CT: control target
= control target key end

     0   :  { %8 = vsyncpa [#allocation3], 0  ;;  %s4458_s0 = inlined_call_operand.hbm [shape: f32[2,18,18,4], index: 0, kind: input, shape index: {}]   ;;  %s4459_s1 = inlined_call_operand.hbm [shape: f32[36,8], index: 1, kind: input, shape index: {}]   ;;  %s4460_s2 = inlined_call_operand.hbm [shape: f32[1,8], index: 2, kind: input, shape index: {}]   ;;  %s4461_s3 = inlined_call_operand.hbm [shape: f32[2,16,16,8], index: 3, kind: output, shape index: {}]  }
   0x1   :  { %10 = vsyncpa [#allocation3 + $0x1], 0 }
   0x2   :  { %11 = vsyncpa [#allocation6], 0 }
   0x3   :  { %12 = vsyncpa [#allocation4], 0 }
   0x4   :  { %14 = vsyncpa [#allocation4 + $0x1], 0  ;;  %s2465_s12 = smov 0   ;;  %s2467_s13 = smov 0  }
   0x5   :  { %s2469_s14 = smov 0   ;;  %s2471_s15 = smov 0  }
   0x6 LB: > { %s2486_s16 = sadd.s32 4294967295, %s2428_s15   ;;  %s2014_s17 = sadd.s32 4294967294, %s2428_s15   ;;  %s2428_s15 = sphi %s2471_s15, %s4763_s15   ;;  %s2424_s14 = sphi %s2469_s14, %s4762_s14   ;;  %s2420_s13 = sphi %s2467_s13, %s4761_s13   ;;  %s2416_s12 = sphi %s2465_s12, %s4760_s12  }
   0x7   : > { %p40_p0 = scmp.ne.s32.totalorder %s2420_s13, %s2416_s12  ;;  %p4462_p1 = scmp.eq.s32.totalorder %s2486_s16, 0 }
   0x8   : > { %p112_p3 = scmp.eq.s32.totalorder %s2014_s17, 1  ;;  %p2015_p5 = scmp.ge.s32.totalorder %s2428_s15, 1 }
   0x9   : > { %p2495_p4 = por %p4462_p1, %p40_p0  ;;  %p119_p7 = scmp.lt.s32.totalorder %s2428_s15, 3 }
   0xa   : > { %p2500_p6 = por %p112_p3, %p40_p0  ;;  %s2430_s21 = smov [#allocation5]  }
   0xb   : > { %s4569_s18 = scalar_select %p2495_p4, 1, 0 }
   0xc   : > { %s4570_s19 = scalar_select %p2500_p6, 1, 0 }
   0xd   : > { %p2505_p8 = pnand %p2015_p5, %p119_p7  ;;  %s131_s22 = sshll.u32 %s2430_s21, 4  ;;  %s2509_s22 = int_to_ptr.vmem [resolvable:$true] %s131_s22 }
   0xe   : > { %s2431_s24 = smov [#allocation7]   ;;  %s2272_s28 = scalar_lea.hbm %s4459_s1, 640 }
   0xf   : > { %p2188_p9 = pneg %p2505_p8  ;;  %s145_s25 = sshll.u32 %s2431_s24, 4  ;;  %s2520_s25 = int_to_ptr.vmem [resolvable:$true] %s145_s25 }
  0x10   : > { %p2273_p12 = scmp.ne.s32.totalorder %s4459_s1, %s2272_s28  ;;  %p2279_p5 = scmp.lt.u32.totalorder %s2272_s28, %s4459_s1 }
  0x11   : > { %p2516_p11 = pnand %p2188_p9, %p4462_p1 }
  0x13   : > { %p2274_p13 = pneg %p2516_p11 }
  0x15   : > { %p2275_p0 = pnand %p2274_p13, %p2273_p12 }
  0x17   : > { %p2276_p3 = pneg %p2275_p0 }
  0x19   : > { %p2281_p7 = pnand %p2279_p5, %p2276_p3 }
  0x1b   : > { %2284 = shalt.err (!%p2281_p7)
}
  0x1c   : > { %s2285_s6 = scalar_lea.vmem %s2509_s22, 640  ;;  %p2293_p2 = scmp.lt.s32.totalorder %s2509_s22, %s2509_s22 }
  0x1d   : > { %p2286_p9 = scmp.ne.s32.totalorder %s2509_s22, %s2285_s6  ;;  %p2294_p12 = scmp.lt.s32.totalorder %s2285_s6, %s2285_s6 }
  0x1f   : > { %p2288_p10 = pnand %p2286_p9, %p2274_p13  ;;  %p2295_p0 = por %p2294_p12, %p2293_p2 }
  0x21   : > { %p2289_p1 = pneg %p2288_p10 }
  0x23   : > { %p2296_p6 = pnand %p2295_p0, %p2289_p1 }
  0x25   : > { %2299 = shalt.err (!%p2296_p6)
}
  0x26   : > { %s2432_s7 = smov 128   ;;  %s2433_s8 = smov 8  }
  0x27   : > { %2191 = dma.hbm_to_vmem [thread:$0]  (!%p2516_p11), %s4459_s1, 640, %s2509_s22, [#allocation6], %s2432_s7, %s2432_s7, %s2433_s8  }
  0x28   : > { %s2300_s21 = scalar_lea.hbm %s4460_s2, 16 }
  0x29   : > { %p2301_p1 = scmp.ne.s32.totalorder %s4460_s2, %s2300_s21  ;;  %p2307_p10 = scmp.lt.u32.totalorder %s2300_s21, %s4460_s2 }
  0x2b   : > { %p2303_p2 = pnand %p2301_p1, %p2274_p13 }
  0x2d   : > { %p2304_p6 = pneg %p2303_p2 }
  0x2f   : > { %p2309_p3 = pnand %p2307_p10, %p2304_p6 }
  0x31   : > { %2312 = shalt.err (!%p2309_p3)
}
  0x32   : > { %s2313_s22 = scalar_lea.vmem %s2520_s25, 16  ;;  %s2320_s29 = scalar_lea.vmem %s2520_s25, 32 }
  0x33   : > { %p2314_p5 = scmp.ne.s32.totalorder %s2520_s25, %s2313_s22  ;;  %p2321_p12 = scmp.lt.s32.totalorder %s2520_s25, %s2520_s25 }
  0x34   : > { %p2322_p0 = scmp.lt.s32.totalorder %s2320_s29, %s2313_s22 }
  0x35   : > { %p2316_p7 = pnand %p2314_p5, %p2274_p13 }
  0x36   : > { %p2323_p1 = por %p2322_p0, %p2321_p12 }
  0x37   : > { %p2317_p9 = pneg %p2316_p7 }
  0x39   : > { %p2324_p2 = pnand %p2323_p1, %p2317_p9 }
  0x3b   : > { %2327 = shalt.err (!%p2324_p2)
}
  0x3c   : > { %2194 = dma.hbm_to_vmem [thread:$0]  (!%p2516_p11), %s4460_s2, 16, %s2520_s25, [#allocation6]  }
  0x3d   : > { %s2579_s5 = sadd.s32 1, %s2428_s15   ;;  %s27_s23 = sadd.s32 1, %s2424_s14 }
  0x3e   : > { %s24_s6 = ssub.s32 %s2428_s15, %s2579_s5  ;;  %p34_p13 = scmp.ne.s32.totalorder %s2424_s14, %s2420_s13 }
  0x3f   : > { %p25_p6 = scmp.eq.s32.totalorder %s24_s6, 0  ;;  %p35_p10 = scmp.eq.s32.totalorder %s2428_s15, 0 }
  0x40   : > { %p4573_p3 = scmp.eq.s32.totalorder %s2486_s16, 1  ;;  %p2205_p7 = scmp.lt.s32.totalorder %s2428_s15, 2 }
  0x41   : > { %s2595_s10 = scalar_select %p25_p6, %s2424_s14, %s27_s23  }
  0x42   : > { %p2589_p5 = por %p4573_p3, %p34_p13  ;;  %p36_p9 = por %p35_p10, %p34_p13 }
  0x43   : > { %s156_s11 = sand.u32 1, %s2424_s14   ;;  %s2174_s25 = smul.u32 6912, %s2428_s15 }
  0x44   : > { %s4574_s9 = scalar_select %p2589_p5, 1, 0 }
  0x45   : > { %s2173_s17 = smul.u32 432, %s156_s11  ;;  %p2599_p11 = pnand %p2205_p7, %p36_p9 }
  0x46   : > { %s2606_s27 = scalar_lea.hbm %s4458_s0, %s2174_s25  ;;  %s2610_s29 = scalar_lea.sflag [#allocation3], %s156_s11 }
  0x47   : > { %s160_s28 = scalar_lea.vmem [#allocation2], %s2173_s17  ;;  %s2328_s30 = scalar_lea.hbm %s2606_s27, 6912 }
  0x48   : > { %s167_s22 = sshll.u32 %s160_s28, 4  ;;  %p2329_p12 = scmp.ne.s32.totalorder %s2606_s27, %s2328_s30  ;;  %s2608_s22 = int_to_ptr.vmem [resolvable:$true] %s167_s22 }
  0x49   : > { %p2330_p0 = pneg %p2599_p11  ;;  %s2333_s6 = scalar_lea.hbm %s4458_s0, 13824 }
  0x4a   : > { %p2334_p13 = scmp.lt.u32.totalorder %s2606_s27, %s4458_s0  ;;  %p2335_p6 = scmp.lt.u32.totalorder %s2333_s6, %s2328_s30 }
  0x4b   : > { %p2331_p1 = pnand %p2330_p0, %p2329_p12  ;;  %p2337_p3 = scmp.lt.u32.totalorder %s2328_s30, %s2606_s27 }
  0x4c   : > { %p2336_p10 = por %p2335_p6, %p2334_p13 }
  0x4d   : > { %p2332_p2 = pneg %p2331_p1 }
  0x4e   : > { %p2338_p7 = por %p2337_p3, %p2336_p10 }
  0x50   : > { %p2339_p9 = pnand %p2338_p7, %p2332_p2 }
  0x52   : > { %2342 = shalt.err (!%p2339_p9)
}
  0x53   : > { %s2343_s11 = scalar_lea.vmem %s2608_s22, 6912  ;;  %s2434_s17 = smov [#allocation2]  }
  0x54   : > { %p2344_p12 = scmp.ne.s32.totalorder %s2608_s22, %s2343_s11  ;;  %s2348_s26 = sshll.u32 %s2434_s17, 4  ;;  %s2349_s26 = int_to_ptr.vmem [resolvable:$false] %s2348_s26 }
  0x55   : > { %s2350_s28 = scalar_lea.vmem %s2349_s26, 13824  ;;  %p2351_p4 = scmp.lt.s32.totalorder %s2608_s22, %s2349_s26 }
  0x56   : > { %p2346_p1 = pnand %p2344_p12, %p2330_p0  ;;  %p2352_p13 = scmp.lt.s32.totalorder %s2350_s28, %s2343_s11 }
  0x58   : > { %p2347_p5 = pneg %p2346_p1  ;;  %p2353_p6 = por %p2352_p13, %p2351_p4 }
  0x5a   : > { %p2354_p10 = pnand %p2353_p6, %p2347_p5 }
  0x5c   : > { %2357 = shalt.err (!%p2354_p10)
}
  0x5d   : > { %2198 = dma.hbm_to_vmem [thread:$0]  (!%p2599_p11), %s2606_s27, 6912, %s2608_s22, %s2610_s29, %s2432_s7, %s2432_s7, %s2433_s8  }
  0x5e   : > { %179 = sbr.rel (%p2505_p8) target bundleno = 968 (0x3c8), region = 32 }
  0x65   : > { %s2644_s30 = sand.u32 1, %s2420_s13   ;;  %p4576_p4 = scmp.ne.s32.totalorder %s4569_s18, 0 }
  0x66   : > { %s2175_s4 = smul.u32 432, %s2644_s30  ;;  %s182_s23 = scalar_lea.sflag [#allocation3], %s2644_s30 }
  0x68   : > { %s2648_s6 = scalar_lea.vmem [#allocation2], %s2175_s4 }
  0x69   : > { %2403 = dma.done.wait (%p4576_p4), %s182_s23, 6912  }
  0x6a   : > { %2405 = vsyncadd (%p4576_p4), %s182_s23, 4294960384  ;;  %p4577_p5 = scmp.eq.s32.totalorder %s2486_s16, 0 }
  0x6c   : > { %2407 = dma.done.wait (%p4577_p5), [#allocation6], 656   ;;  %p4578_p8 = pmov %p4577_p5 }
  0x6d   : > { %v2659_v0 = vld [vmem:[%s2648_s6 + $0x18] sm:$0xff]  ;;  %v2662_v1 = vld [vmem:[%s2648_s6 + $0x20] sm:$0xff]  ;;  %vm318_vm0 = vcmask 1046528   ;;  %v2670_v5 = vld [vmem:[%s2648_s6 + $0x8] sm:$0xff]  ;;  %s2435_s18 = smov 4   ;;  %vm495_vm1 = vcmask 1045504  }
  0x6e   : > { %2409 = vsyncadd (%p4578_p8), [#allocation6], 4294966640  ;;  %v2665_v2 = vld [vmem:[%s2648_s6] sm:$0xff]  ;;  %v324_v3 = vrot.slane %v2659_v0, 1  ;;  %v325_v4 = vrot.slane %v2662_v1, 1  ;;  %v320_v8 = vrot.slane %v2670_v5, 1 }
  0x6f   : > { %v319_v6 = vrot.slane %v2665_v2, 1  ;;  %v2674_v7 = vld [vmem:[%s2648_s6 + $0x28] sm:$0x3]  ;;  %v2679_v10 = vld [vmem:[%s2648_s6 + $0x10] sm:$0x3]  ;;  %v2682_v11 = vld [vmem:[%s2648_s6 + $0x38] sm:$0xff] }
  0x70   : > { %v327_v9 = vrot.slane %v2674_v7, 1  ;;  %v2685_v12 = vsel %vm318_vm0, %v324_v3, %v325_v4  ;;  %v322_v13 = vrot.slane %v2679_v10, 1  ;;  %v2689_v14 = vld [vmem:[%s2648_s6 + $0x40] sm:$0x3]  ;;  %v2692_v15 = vld [vmem:[%s2648_s6 + $0x30] sm:$0xff]  ;;  %v330_v18 = vrot.slane %v2682_v11, 1 }
  0x71   : > { %403 = vrot.lane.b32.xlu1 %v2685_v12, %s2435_s18  ;;  %v321_v16 = vsel %vm318_vm0, %v319_v6, %v320_v8  ;;  %v332_v19 = vrot.slane %v2689_v14, 1  ;;  %v329_v21 = vrot.slane %v2692_v15, 1  ;;  %v2706_v22 = vld [vmem:[%s2648_s6 + $0x50] sm:$0xff]  ;;  %v2709_v23 = vld [vmem:[%s2648_s6 + $0x58] sm:$0x3]  ;;  %v2712_v24 = vld [vmem:[%s2648_s6 + $0x48] sm:$0xff] }
  0x72   : > { %399 = vrot.lane.b32.xlu0 %v321_v16, %s2435_s18  ;;  %v2699_v17 = vsel %vm318_vm0, %v325_v4, %v327_v9  ;;  %v323_v20 = vsel %vm318_vm0, %v320_v8, %v322_v13  ;;  %v335_v26 = vrot.slane %v2706_v22, 1  ;;  %v337_v27 = vrot.slane %v2709_v23, 1  ;;  %v2727_v30 = vld [vmem:[%s2648_s6 + $0x68] sm:$0xff]  ;;  %v2730_v31 = vld [vmem:[%s2648_s6 + $0x70] sm:$0x3]  ;;  %v2733_v32 = vld [vmem:[%s2648_s6 + $0x60] sm:$0xff] }
  0x73   : > { %v2718_v25 = vsel %vm318_vm0, %v330_v18, %v332_v19  ;;  %v2723_v28 = vsel %vm318_vm0, %v329_v21, %v330_v18  ;;  %v334_v29 = vrot.slane %v2712_v24, 1  ;;  %v340_v34 = vrot.slane %v2727_v30, 1  ;;  %v2749_v38 = vld [vmem:[%s2648_s6 + $0x80] sm:$0xff]  ;;  %v2752_v39 = vld [vmem:[%s2648_s6 + $0x88] sm:$0x3]  ;;  %v2755_v40 = vld [vmem:[%s2648_s6 + $0x78] sm:$0xff] }
  0x74   : > { %v2740_v33 = vsel %vm318_vm0, %v335_v26, %v337_v27  ;;  %v342_v35 = vrot.slane %v2730_v31, 1  ;;  %v339_v37 = vrot.slane %v2733_v32, 1  ;;  %v345_v42 = vrot.slane %v2749_v38, 1  ;;  %v2771_v46 = vld [vmem:[%s2648_s6 + $0x98] sm:$0xff]  ;;  %v2774_v47 = vld [vmem:[%s2648_s6 + $0xa0] sm:$0x3] }
  0x75   : > { %405 = vrot.lane.b32.xlu1 %v2699_v17, %s2435_s18  ;;  %v2745_v36 = vsel %vm318_vm0, %v334_v29, %v335_v26  ;;  %v347_v43 = vrot.slane %v2752_v39, 1  ;;  %v344_v45 = vrot.slane %v2755_v40, 1  ;;  %v2777_v48 = vld [vmem:[%s2648_s6 + $0x90] sm:$0xff]  ;;  %v350_v50 = vrot.slane %v2771_v46, 1  ;;  %v2796_v55 = vld [vmem:[%s2648_s6 + $0xb8] sm:$0x3] }
  0x76   : > { %401 = vrot.lane.b32.xlu0 %v323_v20, %s2435_s18  ;;  %4579 = vst [vmem:[#allocation12_spill] sm:$0xff] %v2745_v36  ;;  %v2762_v41 = vsel %vm318_vm0, %v340_v34, %v342_v35  ;;  %v2767_v44 = vsel %vm318_vm0, %v339_v37, %v340_v34  ;;  %v352_v51 = vrot.slane %v2774_v47, 1  ;;  %v349_v53 = vrot.slane %v2777_v48, 1  ;;  %v2793_v54 = vld [vmem:[%s2648_s6 + $0xb0] sm:$0xff]  ;;  %v2799_v56 = vld [vmem:[%s2648_s6 + $0xa8] sm:$0xff]  ;;  %v2821_v3 = vld [vmem:[%s2648_s6 + $0xc0] sm:$0xff] }
  0x77   : > { %4580 = vst [vmem:[#allocation13_spill] sm:$0xff] %v2762_v41  ;;  %4581 = vst [vmem:[#allocation14_spill] sm:$0xff] %v2767_v44  ;;  %v2784_v49 = vsel %vm318_vm0, %v345_v42, %v347_v43  ;;  %v2789_v52 = vsel %vm318_vm0, %v344_v45, %v345_v42  ;;  %v355_v58 = vrot.slane %v2793_v54, 1  ;;  %v357_v59 = vrot.slane %v2796_v55, 1  ;;  %v2815_v62 = vld [vmem:[%s2648_s6 + $0xc8] sm:$0xff]  ;;  %v2837_v16 = vld [vmem:[%s2648_s6 + $0xe0] sm:$0xff] }
  0x78   : > { %4582 = vst [vmem:[#allocation15_spill] sm:$0xff] %v2784_v49  ;;  %4583 = vst [vmem:[#allocation16_spill] sm:$0xff] %v2789_v52  ;;  %v2806_v57 = vsel %vm318_vm0, %v350_v50, %v352_v51  ;;  %v2811_v60 = vsel %vm318_vm0, %v349_v53, %v350_v50  ;;  %v354_v61 = vrot.slane %v2799_v56, 1  ;;  %v2818_v63 = vld [vmem:[%s2648_s6 + $0xd0] sm:$0x3]  ;;  %v360_v6 = vrot.slane %v2815_v62, 1 }
  0x79   : > { %409 = vrot.lane.b32.xlu1 %v2718_v25, %s2435_s18  ;;  %4584 = vst [vmem:[#allocation17_spill] sm:$0xff] %v2806_v57  ;;  %4585 = vst [vmem:[#allocation18_spill] sm:$0xff] %v2811_v60  ;;  %v2828_v4 = vsel %vm318_vm0, %v355_v58, %v357_v59  ;;  %v362_v8 = vrot.slane %v2818_v63, 1  ;;  %v359_v13 = vrot.slane %v2821_v3, 1  ;;  %v2840_v18 = vld [vmem:[%s2648_s6 + $0xe8] sm:$0x3] }
  0x7a   : > { %407 = vrot.lane.b32.xlu0 %v2723_v28, %s2435_s18  ;;  %4586 = vst [vmem:[#allocation19_spill] sm:$0xff] %v2828_v4  ;;  %v2833_v9 = vsel %vm318_vm0, %v354_v61, %v355_v58  ;;  %v2843_v19 = vld [vmem:[%s2648_s6 + $0xd8] sm:$0xff]  ;;  %v365_v21 = vrot.slane %v2837_v16, 1  ;;  %v367_v26 = vrot.slane %v2840_v18, 1  ;;  %v2862_v35 = vld [vmem:[%s2648_s6 + $0x100] sm:$0x3] }
  0x7b   : > { %4587 = vst [vmem:[#allocation20_spill] sm:$0xff] %v2833_v9  ;;  %v2850_v20 = vsel %vm318_vm0, %v360_v6, %v362_v8  ;;  %v2855_v27 = vsel %vm318_vm0, %v359_v13, %v360_v6  ;;  %v364_v29 = vrot.slane %v2843_v19, 1  ;;  %v2859_v34 = vld [vmem:[%s2648_s6 + $0xf8] sm:$0xff]  ;;  %v2865_v37 = vld [vmem:[%s2648_s6 + $0xf0] sm:$0xff]  ;;  %v372_v45 = vrot.slane %v2862_v35, 1  ;;  %v2887_v59 = vld [vmem:[%s2648_s6 + $0x108] sm:$0xff] }
  0x7c   : > { %4588 = vst [vmem:[#allocation21_spill] sm:$0xff] %v2850_v20  ;;  %4589 = vst [vmem:[#allocation22_spill] sm:$0xff] %v2855_v27  ;;  %v2872_v42 = vsel %vm318_vm0, %v365_v21, %v367_v26  ;;  %v370_v43 = vrot.slane %v2859_v34, 1  ;;  %v369_v51 = vrot.slane %v2865_v37, 1  ;;  %v2881_v53 = vld [vmem:[%s2648_s6 + $0x110] sm:$0xff]  ;;  %v2903_v26 = vld [vmem:[%s2648_s6 + $0x128] sm:$0xff] }
  0x7d   : > { %413 = vrot.lane.b32.xlu1 %v2740_v33, %s2435_s18  ;;  %4590 = vst [vmem:[#allocation23_spill] sm:$0xff] %v2872_v42  ;;  %v2877_v50 = vsel %vm318_vm0, %v364_v29, %v365_v21  ;;  %v2884_v58 = vld [vmem:[%s2648_s6 + $0x118] sm:$0x3]  ;;  %v375_v6 = vrot.slane %v2881_v53, 1  ;;  %v374_v21 = vrot.slane %v2887_v59, 1  ;;  %4594 = vst [vmem:[#allocation27_spill] sm:$0xff] %v2903_v26 }
  0x7e   : > { %411 = vrot.lane.b32.xlu0 %v2745_v36, %s2435_s18  ;;  %4591 = vst [vmem:[#allocation24_spill] sm:$0xff] %v2877_v50  ;;  %v2894_v61 = vsel %vm318_vm0, %v370_v43, %v372_v45  ;;  %v377_v8 = vrot.slane %v2884_v58, 1  ;;  %v2899_v13 = vsel %vm318_vm0, %v369_v51, %v370_v43  ;;  %v2906_v29 = vld [vmem:[%s2648_s6 + $0x130] sm:$0x3]  ;;  %v380_v43 = vrot.slane %v2903_v26, 1  ;;  %s2436_s20 = smov 8  }
  0x7f   : > { %4592 = vst [vmem:[#allocation25_spill] sm:$0xff] %v2894_v61  ;;  %4593 = vst [vmem:[#allocation26_spill] sm:$0xff] %v2899_v13  ;;  %v382_v51 = vrot.slane %v2906_v29, 1  ;;  %s2437_s7 = smov 12   ;;  %s2438_s8 = smov 16   ;;  %vm1647_vm2 = vcmask 1043456  }
  0x80   : > { %v2916_v45 = vsel %vm318_vm0, %v375_v6, %v377_v8  ;;  %s2439_s21 = smov 20   ;;  %s2440_s27 = smov 24   ;;  %vm1274_vm3 = vcmask 31744   ;;  %vm1307_vm4 = vcmask 64512   ;;  %vm1340_vm5 = vcmask 97280  }
  0x81   : > { %417 = vrot.lane.b32.xlu1 %v2762_v41, %s2435_s18  ;;  %4596 = vst [vmem:[#allocation29_spill] sm:$0xff] %v2916_v45  ;;  %v2938_v8 = vsel %vm318_vm0, %v380_v43, %v382_v51  ;;  %v2947_v41 = vld [vmem:[%s2648_s6 + $0x158] sm:$0xff]  ;;  %s2441_s22 = smov 28   ;;  %s2442_s29 = smov 32   ;;  %vm1373_vm6 = vcmask 130048   ;;  %vm1406_vm7 = vcmask 162816  }
  0x82   : > { %415 = vrot.lane.b32.xlu0 %v2767_v44, %s2435_s18  ;;  %4600 = vst [vmem:[#allocation33_spill] sm:$0xff] %v2938_v8  ;;  %4602 = vst [vmem:[#allocation35_spill] sm:$0xff] %v2947_v41  ;;  %v2950_v44 = vld [vmem:[%s2648_s6 + $0x160] sm:$0x3]  ;;  %vm1439_vm8 = vcmask 195584   ;;  %vm1472_vm9 = vcmask 228352  }
  0x83   : > { %vm1505_vm10 = vcmask 261120   ;;  %vm1550_vm11 = vcmask 293888   ;;  %s2023_s25 = sshll.u32 %s2644_s30, 8  ;;  %s2063_s11 = sshll.u32 %s2486_s16, 12 }
  0x84   : > { %s4251_s24 = scalar_lea.vmem [#allocation8], %s2023_s25  ;;  %s4402_s4 = scalar_lea.hbm %s4461_s3, %s2063_s11 }
  0x85   : > { %421 = vrot.lane.b32.xlu1 %v2784_v49, %s2435_s18  ;;  %s1922_s17 = sshll.u32 %s4251_s24, 4  ;;  %s1909_s16 = scalar_lea.sflag [#allocation4], %s2644_s30  ;;  %s4407_s17 = int_to_ptr.vmem [resolvable:$true] %s1922_s17 }
  0x86   : > { %419 = vrot.lane.b32.xlu0 %v2789_v52, %s2435_s18  ;;  %s2358_s23 = scalar_lea.vmem %s4407_s17, 4096  ;;  %p4757_p0 = scmp.ne.s32.totalorder %s4574_s9, 0 }
  0x87   : > { %p2359_p11 = scmp.ne.s32.totalorder %s4407_s17, %s2358_s23 }
  0x89   : > { %425 = vrot.lane.b32.xlu1 %v2806_v57, %s2435_s18  ;;  %v2928_v57 = vld [vmem:[%s2648_s6 + $0x148] sm:$0x3]  ;;  %p2360_p2 = pnand %p2359_p11, %p4757_p0 }
  0x8a   : > { %423 = vrot.lane.b32.xlu0 %v2811_v60, %s2435_s18  ;;  %v2931_v60 = vld [vmem:[%s2648_s6 + $0x138] sm:$0xff] }
  0x8b   : > { %4599 = vst [vmem:[#allocation32_spill] sm:$0xff] %v2931_v60  ;;  %v384_v52 = vrot.slane %v2931_v60, 1  ;;  %p2361_p3 = pneg %p2360_p2 }
  0x8d   : > { %429 = vrot.lane.b32.xlu1 %v2828_v4, %s2435_s18 }
  0x8e   : > { %427 = vrot.lane.b32.xlu0 %v2833_v9, %s2435_s18  ;;  %v2925_v9 = vld [vmem:[%s2648_s6 + $0x140] sm:$0xff] }
  0x8f   : > { %4598 = vst [vmem:[#allocation31_spill] sm:$0xff] %v2925_v9 }
  0x91   : > { %433 = vrot.lane.b32.xlu1 %v2850_v20, %s2435_s18  ;;  %v2909_v20 = vld [vmem:[%s2648_s6 + $0x120] sm:$0xff] }
  0x92   : > { %431 = vrot.lane.b32.xlu0 %v2855_v27, %s2435_s18  ;;  %4595 = vst [vmem:[#allocation28_spill] sm:$0xff] %v2909_v20  ;;  %v2921_v27 = vsel %vm318_vm0, %v374_v21, %v375_v6  ;;  %v379_v4 = vrot.slane %v2909_v20, 1  ;;  %v385_v6 = vrot.slane %v2925_v9, 1  ;;  %v387_v21 = vrot.slane %v2928_v57, 1 }
  0x93   : > { %4597 = vst [vmem:[#allocation30_spill] sm:$0xff] %v2921_v27 }
  0x94   : > { %v2943_v49 = vsel %vm318_vm0, %v379_v4, %v380_v43  ;;  %v2960_v51 = vsel %vm318_vm0, %v385_v6, %v387_v21  ;;  %v390_v4 = vrot.slane %v2947_v41, 1  ;;  %v392_v43 = vrot.slane %v2950_v44, 1 }
  0x95   : > { %437 = vrot.lane.b32.xlu1 %v2872_v42, %s2435_s18  ;;  %4601 = vst [vmem:[#allocation34_spill] sm:$0xff] %v2943_v49  ;;  %4604 = vst [vmem:[#allocation37_spill] sm:$0xff] %v2960_v51 }
  0x96   : > { %435 = vrot.lane.b32.xlu0 %v2877_v50, %s2435_s18  ;;  %v2972_v50 = vld [vmem:[%s2648_s6 + $0x178] sm:$0x3]  ;;  %v2982_v21 = vsel %vm318_vm0, %v390_v4, %v392_v43  ;;  %v497_v43 = vrot.slane %v2670_v5, 2  ;;  %v504_v5 = vrot.slane %v2674_v7, 2  ;;  %v506_v7 = vrot.slane %v2692_v15, 2 }
  0x97   : > { %4608 = vst [vmem:[#allocation41_spill] sm:$0xff] %v2982_v21 }
  0x99   : > { %441 = vrot.lane.b32.xlu1 %v2894_v61, %s2435_s18 }
  0x9a   : > { %439 = vrot.lane.b32.xlu0 %v2899_v13, %s2435_s18  ;;  %v2969_v13 = vld [vmem:[%s2648_s6 + $0x170] sm:$0xff] }
  0x9b   : > { %4606 = vst [vmem:[#allocation39_spill] sm:$0xff] %v2969_v13 }
  0x9d   : > { %445 = vrot.lane.b32.xlu1 %v2916_v45, %s2435_s18  ;;  %v2953_v45 = vld [vmem:[%s2648_s6 + $0x150] sm:$0xff] }
  0x9e   : > { %443 = vrot.lane.b32.xlu0 %v2921_v27, %s2435_s18  ;;  %4603 = vst [vmem:[#allocation36_spill] sm:$0xff] %v2953_v45  ;;  %v2965_v27 = vsel %vm318_vm0, %v384_v52, %v385_v6  ;;  %v389_v61 = vrot.slane %v2953_v45, 1  ;;  %v395_v52 = vrot.slane %v2969_v13, 1  ;;  %v397_v6 = vrot.slane %v2972_v50, 1 }
  0x9f   : > { %4605 = vst [vmem:[#allocation38_spill] sm:$0xff] %v2965_v27 }
  0xa1   : > { %449 = vrot.lane.b32.xlu1 %v2938_v8, %s2435_s18  ;;  %v2975_v8 = vld [vmem:[%s2648_s6 + $0x168] sm:$0xff] }
  0xa2   : > { %447 = vrot.lane.b32.xlu0 %v2943_v49, %s2435_s18  ;;  %4607 = vst [vmem:[#allocation40_spill] sm:$0xff] %v2975_v8  ;;  %v2987_v49 = vsel %vm318_vm0, %v389_v61, %v390_v4  ;;  %v394_v42 = vrot.slane %v2975_v8, 1  ;;  %v496_v61 = vrot.slane %v2665_v2, 2 }
  0xa3   : > { %4609 = vst [vmem:[#allocation42_spill] sm:$0xff] %v2987_v49 }
  0xa4   : > { %v3000_v36 = vsel %vm318_vm0, %v394_v42, %v395_v52  ;;  %v501_v42 = vrot.slane %v2659_v0, 2 }
  0xa5   : > { %453 = vrot.lane.b32.xlu1 %v2960_v51, %s2435_s18  ;;  %v2995_v51 = vsel %vm318_vm0, %v395_v52, %v397_v6  ;;  %4611 = vst [vmem:[#allocation44_spill] sm:$0xff] %v3000_v36  ;;  %v502_v6 = vrot.slane %v2662_v1, 2  ;;  %v507_v52 = vrot.slane %v2682_v11, 2 }
  0xa6   : > { %451 = vrot.lane.b32.xlu0 %v2965_v27, %s2435_s18  ;;  %4610 = vst [vmem:[#allocation43_spill] sm:$0xff] %v2995_v51  ;;  %v499_v27 = vrot.slane %v2679_v10, 2  ;;  %v498_v10 = vsel %vm495_vm1, %v496_v61, %v497_v43  ;;  %v512_v61 = vrot.slane %v2706_v22, 2 }
  0xa7   : > { %v3015_v2 = vsel %vm495_vm1, %v502_v6, %v504_v5 }
  0xa8   : > { %v500_v4 = vsel %vm495_vm1, %v497_v43, %v499_v27  ;;  %v509_v27 = vrot.slane %v2689_v14, 2  ;;  %v3033_v14 = vsel %vm495_vm1, %v506_v7, %v507_v52  ;;  %v522_v7 = vrot.slane %v2749_v38, 2 }
  0xa9   : > { %457 = vrot.lane.b32.xlu1 %v2982_v21, %s2435_s18  ;;  %v534_v21 = vrot.slane %v2796_v55, 2 }
  0xaa   : > { %455 = vrot.lane.b32.xlu0 %v2987_v49, %s2435_s18  ;;  %v3028_v43 = vsel %vm495_vm1, %v507_v52, %v509_v27  ;;  %v516_v52 = vrot.slane %v2733_v32, 2  ;;  %v539_v49 = vrot.slane %v2818_v63, 2 }
  0xad   : > { %461 = vrot.lane.b32.xlu1 %v2995_v51, %s2435_s18  ;;  %v3020_v51 = vsel %vm495_vm1, %v501_v42, %v502_v6  ;;  %v511_v6 = vrot.slane %v2712_v24, 2  ;;  %v519_v42 = vrot.slane %v2730_v31, 2 }
  0xae   : > { %459 = vrot.lane.b32.xlu0 %v3000_v36, %s2435_s18  ;;  %v529_v36 = vrot.slane %v2774_v47, 2 }
  0xb1   : > { %578 = vrot.lane.b32.xlu1 %v500_v4, %s2436_s20  ;;  %v514_v4 = vrot.slane %v2709_v23, 2  ;;  %v3046_v23 = vsel %vm495_vm1, %v511_v6, %v512_v61 }
  0xb2   : > { %576 = vrot.lane.b32.xlu0 %v498_v10, %s2436_s20  ;;  %v517_v10 = vrot.slane %v2727_v30, 2 }
  0xb3   : > { %v3041_v5 = vsel %vm495_vm1, %v512_v61, %v514_v4  ;;  %v524_v4 = vrot.slane %v2752_v39, 2  ;;  %v521_v61 = vrot.slane %v2755_v40, 2 }
  0xb4   : > { %v3054_v27 = vsel %vm495_vm1, %v517_v10, %v519_v42  ;;  %v3059_v31 = vsel %vm495_vm1, %v516_v52, %v517_v10  ;;  %v527_v42 = vrot.slane %v2771_v46, 2  ;;  %v526_v10 = vrot.slane %v2777_v48, 2 }
  0xb5   : > { %582 = vrot.lane.b32.xlu1 %v3015_v2, %s2436_s20  ;;  %4612 = vst [vmem:[#allocation45_spill] sm:$0xff] %v3054_v27  ;;  %4613 = vst [vmem:[#allocation46_spill] sm:$0xff] %v3059_v31  ;;  %v3067_v6 = vsel %vm495_vm1, %v522_v7, %v524_v4  ;;  %v3072_v39 = vsel %vm495_vm1, %v521_v61, %v522_v7  ;;  %v532_v4 = vrot.slane %v2793_v54, 2  ;;  %v531_v7 = vrot.slane %v2799_v56, 2 }
  0xb6   : > { %580 = vrot.lane.b32.xlu0 %v3020_v51, %s2436_s20  ;;  %4614 = vst [vmem:[#allocation47_spill] sm:$0xff] %v3067_v6  ;;  %4615 = vst [vmem:[#allocation48_spill] sm:$0xff] %v3072_v39  ;;  %v3080_v52 = vsel %vm495_vm1, %v527_v42, %v529_v36  ;;  %v3085_v47 = vsel %vm495_vm1, %v526_v10, %v527_v42  ;;  %v537_v36 = vrot.slane %v2815_v62, 2  ;;  %v536_v42 = vrot.slane %v2821_v3, 2 }
  0xb7   : > { %4616 = vst [vmem:[#allocation49_spill] sm:$0xff] %v3080_v52  ;;  %4617 = vst [vmem:[#allocation50_spill] sm:$0xff] %v3085_v47  ;;  %v3093_v61 = vsel %vm495_vm1, %v532_v4, %v534_v21  ;;  %v3098_v55 = vsel %vm495_vm1, %v531_v7, %v532_v4  ;;  %v542_v21 = vrot.slane %v2837_v16, 2  ;;  %v541_v4 = vrot.slane %v2843_v19, 2 }
  0xb8   : > { %4618 = vst [vmem:[#allocation51_spill] sm:$0xff] %v3093_v61  ;;  %4619 = vst [vmem:[#allocation52_spill] sm:$0xff] %v3098_v55  ;;  %v3106_v10 = vsel %vm495_vm1, %v537_v36, %v539_v49  ;;  %v3111_v63 = vsel %vm495_vm1, %v536_v42, %v537_v36  ;;  %v547_v49 = vrot.slane %v2859_v34, 2  ;;  %v546_v36 = vrot.slane %v2865_v37, 2 }
  0xb9   : > { %586 = vrot.lane.b32.xlu1 %v3028_v43, %s2436_s20  ;;  %4620 = vst [vmem:[#allocation53_spill] sm:$0xff] %v3106_v10  ;;  %4621 = vst [vmem:[#allocation54_spill] sm:$0xff] %v3111_v63 }
  0xba   : > { %584 = vrot.lane.b32.xlu0 %v3033_v14, %s2436_s20 }
  0xbd   : > { %590 = vrot.lane.b32.xlu1 %v3041_v5, %s2436_s20 }
  0xbe   : > { %588 = vrot.lane.b32.xlu0 %v3046_v23, %s2436_s20 }
  0xc1   : > { %594 = vrot.lane.b32.xlu1 %v3054_v27, %s2436_s20 }
  0xc2   : > { %592 = vrot.lane.b32.xlu0 %v3059_v31, %s2436_s20 }
  0xc5   : > { %598 = vrot.lane.b32.xlu1 %v3067_v6, %s2436_s20 }
  0xc6   : > { %596 = vrot.lane.b32.xlu0 %v3072_v39, %s2436_s20 }
  0xc9   : > { %602 = vrot.lane.b32.xlu1 %v3080_v52, %s2436_s20  ;;  %v544_v52 = vrot.slane %v2840_v18, 2  ;;  %v3124_v18 = vsel %vm495_vm1, %v541_v4, %v542_v21 }
  0xca   : > { %600 = vrot.lane.b32.xlu0 %v3085_v47, %s2436_s20  ;;  %4623 = vst [vmem:[#allocation56_spill] sm:$0xff] %v3124_v18  ;;  %v569_v47 = vrot.slane %v2950_v44, 2  ;;  %v572_v44 = vrot.slane %v2969_v13, 2 }
  0xcb   : > { %v3119_v7 = vsel %vm495_vm1, %v542_v21, %v544_v52  ;;  %v552_v52 = vrot.slane %v2881_v53, 2  ;;  %v551_v21 = vrot.slane %v2887_v59, 2 }
  0xcc   : > { %4622 = vst [vmem:[#allocation55_spill] sm:$0xff] %v3119_v7 }
  0xcd   : > { %606 = vrot.lane.b32.xlu1 %v3093_v61, %s2436_s20  ;;  %v549_v61 = vrot.slane %v2862_v35, 2  ;;  %v3137_v35 = vsel %vm495_vm1, %v546_v36, %v547_v49 }
  0xce   : > { %604 = vrot.lane.b32.xlu0 %v3098_v55, %s2436_s20  ;;  %v564_v55 = vrot.slane %v2928_v57, 2 }
  0xcf   : > { %v3132_v42 = vsel %vm495_vm1, %v547_v49, %v549_v61  ;;  %v557_v61 = vrot.slane %v2903_v26, 2  ;;  %v556_v49 = vrot.slane %v2909_v20, 2 }
  0xd1   : > { %610 = vrot.lane.b32.xlu1 %v3106_v10, %s2436_s20  ;;  %v554_v10 = vrot.slane %v2884_v58, 2  ;;  %v3150_v58 = vsel %vm495_vm1, %v551_v21, %v552_v52 }
  0xd2   : > { %608 = vrot.lane.b32.xlu0 %v3111_v63, %s2436_s20  ;;  %v559_v63 = vrot.slane %v2906_v29, 2  ;;  %v3163_v29 = vsel %vm495_vm1, %v556_v49, %v557_v61 }
  0xd3   : > { %v3145_v4 = vsel %vm495_vm1, %v552_v52, %v554_v10  ;;  %v562_v10 = vrot.slane %v2925_v9, 2  ;;  %4625 = vst [vmem:[#allocation58_spill] sm:$0xff] %v3163_v29  ;;  %v561_v52 = vrot.slane %v2931_v60, 2 }
  0xd4   : > { %v3158_v36 = vsel %vm495_vm1, %v557_v61, %v559_v63  ;;  %v567_v63 = vrot.slane %v2947_v41, 2  ;;  %v566_v61 = vrot.slane %v2953_v45, 2 }
  0xd5   : > { %614 = vrot.lane.b32.xlu1 %v3119_v7, %s2436_s20  ;;  %4624 = vst [vmem:[#allocation57_spill] sm:$0xff] %v3158_v36  ;;  %v3171_v21 = vsel %vm495_vm1, %v562_v10, %v564_v55  ;;  %v3178_v57 = vsel %vm495_vm1, %v561_v52, %v562_v10  ;;  %v571_v52 = vrot.slane %v2975_v8, 2 }
  0xd6   : > { %612 = vrot.lane.b32.xlu0 %v3124_v18, %s2436_s20  ;;  %4626 = vst [vmem:[#allocation59_spill] sm:$0xff] %v3171_v21  ;;  %4628 = vst [vmem:[#allocation61_spill] sm:$0xff] %v3178_v57  ;;  %v3188_v55 = vsel %vm495_vm1, %v567_v63, %v569_v47  ;;  %v3195_v10 = vsel %vm495_vm1, %v566_v61, %v567_v63 }
  0xd7   : > { %4630 = vst [vmem:[#allocation63_spill] sm:$0xff] %v3188_v55  ;;  %4632 = vst [vmem:[#allocation65_spill] sm:$0xff] %v3195_v10 }
  0xd9   : > { %618 = vrot.lane.b32.xlu1 %v3132_v42, %s2436_s20 }
  0xda   : > { %616 = vrot.lane.b32.xlu0 %v3137_v35, %s2436_s20 }
  0xdd   : > { %622 = vrot.lane.b32.xlu1 %v3145_v4, %s2436_s20 }
  0xde   : > { %620 = vrot.lane.b32.xlu0 %v3150_v58, %s2436_s20 }
  0xe1   : > { %626 = vrot.lane.b32.xlu1 %v3158_v36, %s2436_s20 }
  0xe2   : > { %624 = vrot.lane.b32.xlu0 %v3163_v29, %s2436_s20 }
  0xe3   : > { %v3175_v6 = vpop.permute.xlu1 %403 }
  0xe4   : > { %4627 = vst [vmem:[#allocation60_spill] sm:$0xff] %v3175_v6  ;;  %v3181_v49 = vpop.permute.xlu0 %399  ;;  %v574_v6 = vrot.slane %v2972_v50, 2  ;;  %v3210_v50 = vsel %vm495_vm1, %v571_v52, %v572_v44 }
  0xe5   : > { %4629 = vst [vmem:[#allocation62_spill] sm:$0xff] %v3181_v49  ;;  %630 = vrot.lane.b32.xlu1 %v3171_v21, %s2436_s20  ;;  %4635 = vst [vmem:[#allocation68_spill] sm:$0xff] %v3210_v50 }
  0xe6   : > { %628 = vrot.lane.b32.xlu0 %v3178_v57, %s2436_s20  ;;  %v3205_v47 = vsel %vm495_vm1, %v572_v44, %v574_v6 }
  0xe7   : > { %v3192_v39 = vpop.permute.xlu1 %405  ;;  %4634 = vst [vmem:[#allocation67_spill] sm:$0xff] %v3205_v47 }
  0xe8   : > { %4631 = vst [vmem:[#allocation64_spill] sm:$0xff] %v3192_v39  ;;  %v3198_v49 = vpop.permute.xlu0 %401 }
  0xe9   : > { %4633 = vst [vmem:[#allocation66_spill] sm:$0xff] %v3198_v49  ;;  %634 = vrot.lane.b32.xlu1 %v3188_v55, %s2436_s20 }
  0xea   : > { %632 = vrot.lane.b32.xlu0 %v3195_v10, %s2436_s20 }
  0xeb   : > { %v3207_v21 = vpop.permute.xlu1 %409 }
  0xec   : > { %v3212_v63 = vpop.permute.xlu0 %407 }
  0xed   : > { %638 = vrot.lane.b32.xlu1 %v3205_v47, %s2436_s20 }
  0xee   : > { %636 = vrot.lane.b32.xlu0 %v3210_v50, %s2436_s20 }
  0xef   : > { %v3218_v61 = vpop.permute.xlu1 %413 }
  0xf0   : > { %v3220_v55 = vpop.permute.xlu0 %411 }
  0xf1   : > { %676 = vrot.lane.b32.xlu1 %v2662_v1, %s2437_s7 }
  0xf2   : > { %674 = vrot.lane.b32.xlu0 %v2659_v0, %s2437_s7 }
  0xf3   : > { %v3226_v6 = vpop.permute.xlu1 %417 }
  0xf4   : > { %v3228_v44 = vpop.permute.xlu0 %415 }
  0xf5   : > { %680 = vrot.lane.b32.xlu1 %v2682_v11, %s2437_s7 }
  0xf6   : > { %678 = vrot.lane.b32.xlu0 %v2692_v15, %s2437_s7 }
  0xf7   : > { %v3234_v52 = vpop.permute.xlu1 %421 }
  0xf8   : > { %v3236_v47 = vpop.permute.xlu0 %419 }
  0xf9   : > { %684 = vrot.lane.b32.xlu1 %v2706_v22, %s2437_s7 }
  0xfa   : > { %682 = vrot.lane.b32.xlu0 %v2712_v24, %s2437_s7 }
  0xfb   : > { %v3242_v0 = vpop.permute.xlu1 %425 }
  0xfc   : > { %v3244_v1 = vpop.permute.xlu0 %423 }
  0xfd   : > { %688 = vrot.lane.b32.xlu1 %v2727_v30, %s2437_s7 }
  0xfe   : > { %686 = vrot.lane.b32.xlu0 %v2733_v32, %s2437_s7 }
  0xff   : > { %v3250_v50 = vpop.permute.xlu1 %429 }
 0x100   : > { %v3252_v39 = vpop.permute.xlu0 %427 }
 0x101   : > { %692 = vrot.lane.b32.xlu1 %v2749_v38, %s2437_s7 }
 0x102   : > { %690 = vrot.lane.b32.xlu0 %v2755_v40, %s2437_s7 }
 0x103   : > { %v3258_v10 = vpop.permute.xlu1 %433 }
 0x104   : > { %4636 = vst [vmem:[#allocation69_spill] sm:$0xff] %v3258_v10  ;;  %v3260_v49 = vpop.permute.xlu0 %431 }
 0x105   : > { %4637 = vst [vmem:[#allocation70_spill] sm:$0xff] %v3260_v49  ;;  %696 = vrot.lane.b32.xlu1 %v2771_v46, %s2437_s7 }
 0x106   : > { %694 = vrot.lane.b32.xlu0 %v2777_v48, %s2437_s7 }
 0x107   : > { %v3266_v57 = vpop.permute.xlu1 %437 }
 0x108   : > { %4638 = vst [vmem:[#allocation71_spill] sm:$0xff] %v3266_v57  ;;  %v3268_v27 = vpop.permute.xlu0 %435 }
 0x109   : > { %4639 = vst [vmem:[#allocation72_spill] sm:$0xff] %v3268_v27  ;;  %700 = vrot.lane.b32.xlu1 %v2793_v54, %s2437_s7 }
 0x10a   : > { %698 = vrot.lane.b32.xlu0 %v2799_v56, %s2437_s7 }
 0x10b   : > { %v3274_v36 = vpop.permute.xlu1 %441 }
 0x10c   : > { %v3276_v10 = vpop.permute.xlu0 %439 }
 0x10d   : > { %704 = vrot.lane.b32.xlu1 %v2815_v62, %s2437_s7 }
 0x10e   : > { %702 = vrot.lane.b32.xlu0 %v2821_v3, %s2437_s7 }
 0x10f   : > { %v3282_v49 = vpop.permute.xlu1 %445 }
 0x110   : > { %4640 = vst [vmem:[#allocation73_spill] sm:$0xff] %v3282_v49  ;;  %v3284_v57 = vpop.permute.xlu0 %443  ;;  %v1541_v49 = vld [vmem:[#allocation5 + $0x18] sm:$0xff] }
 0x111   : > { %4641 = vst [vmem:[#allocation74_spill] sm:$0xff] %v3284_v57  ;;  %708 = vrot.lane.b32.xlu1 %v2837_v16, %s2437_s7  ;;  %v1540_v57 = vld [vmem:[#allocation5 + $0x10] sm:$0xff] }
 0x112   : > { %706 = vrot.lane.b32.xlu0 %v2843_v19, %s2437_s7 }
 0x113   : > { %v3290_v27 = vpop.permute.xlu1 %449 }
 0x114   : > { %4642 = vst [vmem:[#allocation75_spill] sm:$0xff] %v3290_v27  ;;  %v3292_v31 = vpop.permute.xlu0 %447 }
 0x115   : > { %4643 = vst [vmem:[#allocation76_spill] sm:$0xff] %v3292_v31  ;;  %712 = vrot.lane.b32.xlu1 %v2859_v34, %s2437_s7 }
 0x116   : > { %710 = vrot.lane.b32.xlu0 %v2865_v37, %s2437_s7 }
 0x117   : > { %v3298_v62 = vpop.permute.xlu1 %453 }
 0x118   : > { %4644 = vst [vmem:[#allocation77_spill] sm:$0xff] %v3298_v62  ;;  %v3300_v3 = vpop.permute.xlu0 %451 }
 0x119   : > { %4645 = vst [vmem:[#allocation78_spill] sm:$0xff] %v3300_v3  ;;  %716 = vrot.lane.b32.xlu1 %v2881_v53, %s2437_s7 }
 0x11a   : > { %714 = vrot.lane.b32.xlu0 %v2887_v59, %s2437_s7 }
 0x11b   : > { %v3306_v16 = vpop.permute.xlu1 %457 }
 0x11c   : > { %4646 = vst [vmem:[#allocation79_spill] sm:$0xff] %v3306_v16  ;;  %v3308_v19 = vpop.permute.xlu0 %455 }
 0x11d   : > { %4647 = vst [vmem:[#allocation80_spill] sm:$0xff] %v3308_v19  ;;  %720 = vrot.lane.b32.xlu1 %v2903_v26, %s2437_s7 }
 0x11e   : > { %718 = vrot.lane.b32.xlu0 %v2909_v20, %s2437_s7 }
 0x11f   : > { %v3314_v29 = vpop.permute.xlu1 %461 }
 0x120   : > { %4648 = vst [vmem:[#allocation81_spill] sm:$0xff] %v3314_v29  ;;  %v3316_v3 = vpop.permute.xlu0 %459 }
 0x121   : > { %4649 = vst [vmem:[#allocation82_spill] sm:$0xff] %v3316_v3  ;;  %724 = vrot.lane.b32.xlu1 %v2925_v9, %s2437_s7  ;;  %v3339_v3 = vld [vmem:[%s2648_s6 + $0x188] sm:$0xff] }
 0x122   : > { %722 = vrot.lane.b32.xlu0 %v2931_v60, %s2437_s7  ;;  %4654 = vst [vmem:[#allocation87_spill] sm:$0xff] %v3339_v3  ;;  %v4657_v60 = vld [vmem:[#allocation23_spill] sm:$0xff]  ;;  %v4658_v9 = vld [vmem:[#allocation24_spill] sm:$0xff] }
 0x123   : > { %v3322_v16 = vpop.permute.xlu1 %578 }
 0x124   : > { %4650 = vst [vmem:[#allocation83_spill] sm:$0xff] %v3322_v16  ;;  %v3324_v19 = vpop.permute.xlu0 %576 }
 0x125   : > { %4651 = vst [vmem:[#allocation84_spill] sm:$0xff] %v3324_v19  ;;  %728 = vrot.lane.b32.xlu1 %v2947_v41, %s2437_s7  ;;  %v3344_v19 = vld [vmem:[%s2648_s6 + $0x180] sm:$0xff] }
 0x126   : > { %726 = vrot.lane.b32.xlu0 %v2953_v45, %s2437_s7  ;;  %4655 = vst [vmem:[#allocation88_spill] sm:$0xff] %v3344_v19 }
 0x127   : > { %v3330_v62 = vpop.permute.xlu1 %582 }
 0x128   : > { %4652 = vst [vmem:[#allocation85_spill] sm:$0xff] %v3330_v62  ;;  %v3332_v29 = vpop.permute.xlu0 %580 }
 0x129   : > { %4653 = vst [vmem:[#allocation86_spill] sm:$0xff] %v3332_v29  ;;  %732 = vrot.lane.b32.xlu1 %v2969_v13, %s2437_s7 }
 0x12a   : > { %730 = vrot.lane.b32.xlu0 %v2975_v8, %s2437_s7 }
 0x12b   : > { %v3341_v16 = vpop.permute.xlu1 %586 }
 0x12c   : > { %v3346_v41 = vpop.permute.xlu0 %584 }
 0x12d   : > { %736 = vrot.lane.b32.xlu1 %v3339_v3, %s2437_s7 }
 0x12e   : > { %734 = vrot.lane.b32.xlu0 %v3344_v19, %s2437_s7 }
 0x12f   : > { %v3352_v62 = vpop.permute.xlu1 %590 }
 0x130   : > { %v3354_v29 = vpop.permute.xlu0 %588 }
 0x131   : > { %778 = vrot.lane.b32.xlu1 %v2699_v17, %s2438_s8  ;;  %v4656_v17 = vld [vmem:[#allocation12_spill] sm:$0xff] }
 0x132   : > { %776 = vrot.lane.b32.xlu0 %v2685_v12, %s2438_s8 }
 0x133   : > { %v3360_v8 = vpop.permute.xlu1 %594 }
 0x134   : > { %v3362_v13 = vpop.permute.xlu0 %592 }
 0x135   : > { %782 = vrot.lane.b32.xlu1 %v2718_v25, %s2438_s8 }
 0x136   : > { %780 = vrot.lane.b32.xlu0 %v2723_v28, %s2438_s8 }
 0x137   : > { %v3368_v3 = vpop.permute.xlu1 %598 }
 0x138   : > { %v3370_v19 = vpop.permute.xlu0 %596 }
 0x139   : > { %786 = vrot.lane.b32.xlu1 %v2740_v33, %s2438_s8 }
 0x13a   : > { %784 = vrot.lane.b32.xlu0 %v4656_v17, %s2438_s8 }
 0x13b   : > { %v3376_v12 = vpop.permute.xlu1 %602 }
 0x13c   : > { %v3378_v45 = vpop.permute.xlu0 %600 }
 0x13d   : > { %810 = vrot.lane.b32.xlu1 %v4657_v60, %s2438_s8 }
 0x13e   : > { %808 = vrot.lane.b32.xlu0 %v4658_v9, %s2438_s8 }
 0x13f   : > { %v3384_v31 = vpop.permute.xlu1 %606 }
 0x140   : > { %v3386_v26 = vpop.permute.xlu0 %604 }
 0x141   : > { %909 = vrot.lane.b32.xlu1 %v3124_v18, %s2439_s21 }
 0x142   : > { %877 = vrot.lane.b32.xlu0 %v3020_v51, %s2439_s21 }
 0x143   : > { %v3392_v27 = vpop.permute.xlu1 %610 }
 0x144   : > { %4659 = vst [vmem:[#allocation12_spill] sm:$0xff] %v3392_v27  ;;  %v3394_v20 = vpop.permute.xlu0 %608 }
 0x145   : > { %4660 = vst [vmem:[#allocation89_spill] sm:$0xff] %v3394_v20  ;;  %911 = vrot.lane.b32.xlu1 %v3119_v7, %s2439_s21  ;;  %v1538_v7 = vld [vmem:[#allocation5] sm:$0xff] }
 0x146   : > { %879 = vrot.lane.b32.xlu0 %v3015_v2, %s2439_s21  ;;  %v1539_v2 = vld [vmem:[#allocation5 + $0x8] sm:$0xff]  ;;  %v4666_v20 = vld [vmem:[#allocation26_spill] sm:$0xff] }
 0x147   : > { %v3400_v60 = vpop.permute.xlu1 %614 }
 0x148   : > { %4661 = vst [vmem:[#allocation90_spill] sm:$0xff] %v3400_v60  ;;  %v3402_v9 = vpop.permute.xlu0 %612  ;;  %v2159_v60 = vpack.c.bf16 %v1539_v2, %v1538_v7  ;;  %v1542_v2 = vld [vmem:[#allocation5 + $0x20] sm:$0xf] }
 0x149   : > { %4662 = vst [vmem:[#allocation91_spill] sm:$0xff] %v3402_v9  ;;  %1007 = vrot.lane.b32.xlu1 %v2865_v37, %s2440_s27 }
 0x14a   : > { %975 = vrot.lane.b32.xlu0 %v2692_v15, %s2440_s27  ;;  %2160 = vmatprep.subr.bf16.mxu0 %v2159_v60 }
 0x14b   : > { %v3408_v51 = vpop.permute.xlu1 %618  ;;  %2167 = vmatprep.subr.bf16.mxu1 %v2159_v60  ;;  %2162 = vmatpush3.bf16.msra.mxu0 %v2159_v60 }
 0x14c   : > { %4663 = vst [vmem:[#allocation92_spill] sm:$0xff] %v3408_v51  ;;  %v3410_v18 = vpop.permute.xlu0 %616  ;;  %2170 = vmatpush3.bf16.msra.mxu1 %v2159_v60 }
 0x14d   : > { %4664 = vst [vmem:[#allocation93_spill] sm:$0xff] %v3410_v18  ;;  %1009 = vrot.lane.b32.xlu1 %v2859_v34, %s2440_s27  ;;  %v2163_v18 = vpack.c.bf16 %v1541_v49, %v1540_v57 }
 0x14e   : > { %977 = vrot.lane.b32.xlu0 %v2682_v11, %s2440_s27 }
 0x14f   : > { %v3416_v9 = vpop.permute.xlu1 %622  ;;  %2164 = vmatprep.subr.bf16.mxu0 %v2163_v18  ;;  %2168 = vmatprep.subr.bf16.mxu1 %v2163_v18 }
 0x150   : > { %v3418_v27 = vpop.permute.xlu0 %620  ;;  %2166 = vmatpush3.bf16.msra.mxu0 %v2163_v18  ;;  %2171 = vmatpush3.bf16.msra.mxu1 %v2163_v18 }
 0x151   : > { %4665 = vst [vmem:[#allocation94_spill] sm:$0xff] %v3418_v27  ;;  %1109 = vrot.lane.b32.xlu1 %v4666_v20, %s2441_s22  ;;  %2109 = vmatprep.subr.msk.mxu0 %vm1647_vm2, %v1542_v2 }
 0x152   : > { %1077 = vrot.lane.b32.xlu0 %v2723_v28, %s2441_s22  ;;  %2169 = vmatprep.subr.msk.mxu1 %vm1647_vm2, %v1542_v2 }
 0x153   : > { %v3424_v51 = vpop.permute.xlu1 %626 }
 0x154   : > { %v3426_v7 = vpop.permute.xlu0 %624  ;;  %2110 = vmatpush3.msk.msra.mxu0 %vm1647_vm2, %v1542_v2  ;;  %2172 = vmatpush3.msk.msra.mxu1 %vm1647_vm2, %v1542_v2 }
 0x155   : > { %1079 = vrot.lane.b32.xlu1 %v2718_v25, %s2441_s22  ;;  %v4667_v25 = vld [vmem:[#allocation25_spill] sm:$0xff] }
 0x156   : > { %812 = vrot.lane.b32.xlu0 %v4666_v20, %s2438_s8 }
 0x157   : > { %v3432_v27 = vpop.permute.xlu1 %630 }
 0x158   : > { %v3434_v28 = vpop.permute.xlu0 %628 }
 0x159   : > { %1178 = vrot.lane.b32.xlu1 %v3033_v14, %s2442_s29 }
 0x15a   : > { %1111 = vrot.lane.b32.xlu0 %v4667_v25, %s2441_s22 }
 0x15b   : > { %v3440_v60 = vpop.permute.xlu1 %634 }
 0x15c   : > { %v3442_v20 = vpop.permute.xlu0 %632 }
 0x15d   : > { %814 = vrot.lane.b32.xlu1 %v4667_v25, %s2438_s8 }
 0x15e   : > { %1210 = vrot.lane.b32.xlu0 %v3137_v35, %s2442_s29 }
 0x15f   : > { %v3448_v18 = vpop.permute.xlu1 %638 }
 0x160   : > { %4668 = vst [vmem:[#allocation26_spill] sm:$0xff] %v3448_v18  ;;  %v3450_v57 = vpop.permute.xlu0 %636 }
 0x161   : > { %913 = vrot.lane.b32.xlu1 %v3137_v35, %s2439_s21  ;;  %v1279_v35 = vsel %vm1274_vm3, %v2692_v15, %v3212_v63  ;;  %v1282_v15 = vsel %vm1274_vm3, %v2706_v22, %v3218_v61 }
 0x162   : > { %881 = vrot.lane.b32.xlu0 %v3033_v14, %s2439_s21  ;;  %v1280_v14 = vsel %vm1274_vm3, %v2682_v11, %v3207_v21 }
 0x163   : > { %v3456_v49 = vpop.permute.xlu1 %676 }
 0x164   : > { %4669 = vst [vmem:[#allocation25_spill] sm:$0xff] %v3456_v49  ;;  %v3458_v2 = vpop.permute.xlu0 %674 }
 0x165   : > { %1212 = vrot.lane.b32.xlu1 %v3132_v42, %s2442_s29 }
 0x166   : > { %1180 = vrot.lane.b32.xlu0 %v3028_v43, %s2442_s29 }
 0x167   : > { %v3464_v25 = vpop.permute.xlu1 %680 }
 0x168   : > { %4670 = vst [vmem:[#allocation95_spill] sm:$0xff] %v3464_v25  ;;  %v3466_v18 = vpop.permute.xlu0 %678  ;;  %v1313_v25 = vsel %vm1307_vm4, %v1280_v14, %v3341_v16 }
 0x169   : > { %4671 = vst [vmem:[#allocation96_spill] sm:$0xff] %v3466_v18  ;;  %915 = vrot.lane.b32.xlu1 %v3132_v42, %s2439_s21  ;;  %v1312_v42 = vsel %vm1307_vm4, %v1279_v35, %v3346_v41  ;;  %v1281_v41 = vsel %vm1274_vm3, %v2712_v24, %v3220_v55 }
 0x16a   : > { %883 = vrot.lane.b32.xlu0 %v3028_v43, %s2439_s21  ;;  %v1315_v43 = vsel %vm1307_vm4, %v1282_v15, %v3352_v62  ;;  %v1314_v16 = vsel %vm1307_vm4, %v1281_v41, %v3354_v29  ;;  %v1283_v29 = vsel %vm1274_vm3, %v2733_v32, %v3228_v44  ;;  %v1286_v44 = vsel %vm1274_vm3, %v2749_v38, %v3234_v52 }
 0x16b   : > { %v685_v18 = vpop.permute.xlu1 %684  ;;  %v1316_v14 = vsel %vm1307_vm4, %v1283_v29, %v3362_v13  ;;  %v1285_v13 = vsel %vm1274_vm3, %v2755_v40, %v3236_v47  ;;  %v1288_v40 = vsel %vm1274_vm3, %v2771_v46, %v3242_v0  ;;  %v1287_v47 = vsel %vm1274_vm3, %v2777_v48, %v3244_v1  ;;  %v4673_v0 = vld [vmem:[#allocation29_spill] sm:$0xff] }
 0x16c   : > { %v3483_v49 = vsel %vm1340_vm5, %v1313_v25, %v685_v18  ;;  %v683_v11 = vpop.permute.xlu0 %682  ;;  %v1318_v15 = vsel %vm1307_vm4, %v1285_v13, %v3370_v19  ;;  %v1321_v52 = vsel %vm1307_vm4, %v1288_v40, %v3376_v12  ;;  %v1320_v19 = vsel %vm1307_vm4, %v1287_v47, %v3378_v45  ;;  %v4681_v40 = vld [vmem:[#allocation27_spill] sm:$0xff] }
 0x16d   : > { %v3486_v21 = vsel %vm1340_vm5, %v1312_v42, %v683_v11  ;;  %1011 = vrot.lane.b32.xlu1 %v2887_v59, %s2440_s27  ;;  %v1290_v48 = vsel %vm1274_vm3, %v2793_v54, %v3250_v50  ;;  %v1289_v45 = vsel %vm1274_vm3, %v2799_v56, %v3252_v39  ;;  %v1296_v50 = vsel %vm1274_vm3, %v2859_v34, %v3274_v36  ;;  %v4676_v36 = vld [vmem:[#allocation73_spill] sm:$0xff] }
 0x16e   : > { %979 = vrot.lane.b32.xlu0 %v2712_v24, %s2440_s27  ;;  %v1284_v24 = vsel %vm1274_vm3, %v2727_v30, %v3226_v6  ;;  %v1323_v1 = vsel %vm1307_vm4, %v1290_v48, %v3384_v31 }
 0x16f   : > { %v689_v63 = vpop.permute.xlu1 %688  ;;  %v1317_v55 = vsel %vm1307_vm4, %v1284_v24, %v3360_v8  ;;  %v1319_v8 = vsel %vm1307_vm4, %v1286_v44, %v3368_v3  ;;  %v4674_v24 = vld [vmem:[#allocation92_spill] sm:$0xff] }
 0x170   : > { %v3503_v18 = vsel %vm1340_vm5, %v1315_v43, %v689_v63  ;;  %v687_v25 = vpop.permute.xlu0 %686  ;;  %v1322_v63 = vsel %vm1307_vm4, %v1289_v45, %v3386_v26  ;;  %v4684_v45 = vld [vmem:[#allocation31_spill] sm:$0xff] }
 0x171   : > { %v3506_v61 = vsel %vm1340_vm5, %v1314_v16, %v687_v25  ;;  %1013 = vrot.lane.b32.xlu1 %v2881_v53, %s2440_s27 }
 0x172   : > { %981 = vrot.lane.b32.xlu0 %v2706_v22, %s2440_s27  ;;  %v4672_v22 = vld [vmem:[#allocation30_spill] sm:$0xff] }
 0x173   : > { %v693_v62 = vpop.permute.xlu1 %692 }
 0x174   : > { %v3523_v35 = vsel %vm1340_vm5, %v1317_v55, %v693_v62  ;;  %v691_v42 = vpop.permute.xlu0 %690  ;;  %v4675_v55 = vld [vmem:[#allocation93_spill] sm:$0xff] }
 0x175   : > { %v3526_v6 = vsel %vm1340_vm5, %v1316_v14, %v691_v42  ;;  %1113 = vrot.lane.b32.xlu1 %v4672_v22, %s2441_s22 }
 0x176   : > { %1081 = vrot.lane.b32.xlu0 %v4656_v17, %s2441_s22 }
 0x177   : > { %v697_v11 = vpop.permute.xlu1 %696 }
 0x178   : > { %v3543_v41 = vsel %vm1340_vm5, %v1319_v8, %v697_v11  ;;  %v695_v43 = vpop.permute.xlu0 %694  ;;  %v4678_v8 = vld [vmem:[#allocation94_spill] sm:$0xff] }
 0x179   : > { %v3546_v38 = vsel %vm1340_vm5, %v1318_v15, %v695_v43  ;;  %1083 = vrot.lane.b32.xlu1 %v2740_v33, %s2441_s22  ;;  %v4680_v43 = vld [vmem:[#allocation75_spill] sm:$0xff] }
 0x17a   : > { %816 = vrot.lane.b32.xlu0 %v4672_v22, %s2438_s8 }
 0x17b   : > { %v701_v3 = vpop.permute.xlu1 %700 }
 0x17c   : > { %v3563_v33 = vsel %vm1340_vm5, %v1321_v52, %v701_v3  ;;  %v699_v17 = vpop.permute.xlu0 %698 }
 0x17d   : > { %v3566_v46 = vsel %vm1340_vm5, %v1320_v19, %v699_v17  ;;  %1182 = vrot.lane.b32.xlu1 %v3046_v23, %s2442_s29 }
 0x17e   : > { %1115 = vrot.lane.b32.xlu0 %v4673_v0, %s2441_s22 }
 0x17f   : > { %v705_v12 = vpop.permute.xlu1 %704 }
 0x180   : > { %v3583_v16 = vsel %vm1340_vm5, %v1323_v1, %v705_v12  ;;  %v703_v25 = vpop.permute.xlu0 %702  ;;  %v4686_v12 = vld [vmem:[#allocation32_spill] sm:$0xff] }
 0x181   : > { %v3586_v54 = vsel %vm1340_vm5, %v1322_v63, %v703_v25  ;;  %818 = vrot.lane.b32.xlu1 %v4673_v0, %s2438_s8 }
 0x182   : > { %1214 = vrot.lane.b32.xlu0 %v3150_v58, %s2442_s29 }
 0x183   : > { %v3592_v56 = vpop.permute.xlu1 %708 }
 0x184   : > { %v3594_v31 = vpop.permute.xlu0 %706 }
 0x185   : > { %917 = vrot.lane.b32.xlu1 %v3150_v58, %s2439_s21  ;;  %v1295_v58 = vsel %vm1274_vm3, %v2865_v37, %v3276_v10  ;;  %v1298_v37 = vsel %vm1274_vm3, %v2881_v53, %v4676_v36  ;;  %v4677_v10 = vld [vmem:[#allocation74_spill] sm:$0xff]  ;;  %v4692_v36 = vld [vmem:[#allocation36_spill] sm:$0xff] }
 0x186   : > { %885 = vrot.lane.b32.xlu0 %v3046_v23, %s2439_s21  ;;  %v1329_v23 = vsel %vm1307_vm4, %v1296_v50, %v4674_v24  ;;  %v1328_v62 = vsel %vm1307_vm4, %v1295_v58, %v4675_v55  ;;  %v1297_v22 = vsel %vm1274_vm3, %v2887_v59, %v4677_v10  ;;  %v1331_v44 = vsel %vm1307_vm4, %v1298_v37, %v3416_v9  ;;  %v4682_v9 = vld [vmem:[#allocation76_spill] sm:$0xff]  ;;  %v4689_v55 = vld [vmem:[#allocation35_spill] sm:$0xff] }
 0x187   : > { %v3600_v26 = vpop.permute.xlu1 %712  ;;  %v1330_v11 = vsel %vm1307_vm4, %v1297_v22, %v4678_v8  ;;  %v1300_v59 = vsel %vm1274_vm3, %v4681_v40, %v4680_v43  ;;  %v4696_v43 = vld [vmem:[#allocation40_spill] sm:$0xff] }
 0x188   : > { %v3602_v39 = vpop.permute.xlu0 %710  ;;  %v1333_v52 = vsel %vm1307_vm4, %v1300_v59, %v3424_v51  ;;  %v4685_v51 = vld [vmem:[#allocation78_spill] sm:$0xff] }
 0x189   : > { %1216 = vrot.lane.b32.xlu1 %v3145_v4, %s2442_s29 }
 0x18a   : > { %1184 = vrot.lane.b32.xlu0 %v3041_v5, %s2442_s29 }
 0x18b   : > { %v717_v29 = vpop.permute.xlu1 %716 }
 0x18c   : > { %v3619_v14 = vsel %vm1340_vm5, %v1329_v23, %v717_v29  ;;  %v715_v42 = vpop.permute.xlu0 %714  ;;  %v4688_v29 = vld [vmem:[#allocation79_spill] sm:$0xff] }
 0x18d   : > { %v3622_v34 = vsel %vm1340_vm5, %v1328_v62, %v715_v42  ;;  %919 = vrot.lane.b32.xlu1 %v3145_v4, %s2439_s21  ;;  %v1304_v62 = vsel %vm1274_vm3, %v4689_v55, %v4688_v29  ;;  %v4691_v42 = vld [vmem:[#allocation80_spill] sm:$0xff]  ;;  %v4702_v55 = vld [vmem:[#allocation57_spill] sm:$0xff] }
 0x18e   : > { %887 = vrot.lane.b32.xlu0 %v3041_v5, %s2439_s21  ;;  %v4679_v5 = vld [vmem:[#allocation28_spill] sm:$0xff]  ;;  %v1337_v37 = vsel %vm1307_vm4, %v1304_v62, %v3440_v60  ;;  %v4695_v60 = vld [vmem:[#allocation82_spill] sm:$0xff]  ;;  %v4703_v62 = vld [vmem:[#allocation45_spill] sm:$0xff] }
 0x18f   : > { %v721_v13 = vpop.permute.xlu1 %720  ;;  %v1299_v47 = vsel %vm1274_vm3, %v4679_v5, %v4682_v9 }
 0x190   : > { %v3639_v4 = vsel %vm1340_vm5, %v1331_v44, %v721_v13  ;;  %v719_v15 = vpop.permute.xlu0 %718  ;;  %v1332_v19 = vsel %vm1307_vm4, %v1299_v47, %v3426_v7  ;;  %v1301_v7 = vsel %vm1274_vm3, %v4686_v12, %v4685_v51 }
 0x191   : > { %v3642_v53 = vsel %vm1340_vm5, %v1330_v11, %v719_v15  ;;  %1015 = vrot.lane.b32.xlu1 %v4679_v5, %s2440_s27  ;;  %v1334_v50 = vsel %vm1307_vm4, %v1301_v7, %v3434_v28  ;;  %v1303_v28 = vsel %vm1274_vm3, %v4692_v36, %v4691_v42  ;;  %v4693_v11 = vld [vmem:[#allocation81_spill] sm:$0xff]  ;;  %v4694_v15 = vld [vmem:[#allocation39_spill] sm:$0xff]  ;;  %v4700_v7 = vld [vmem:[#allocation58_spill] sm:$0xff] }
 0x192   : > { %983 = vrot.lane.b32.xlu0 %v2733_v32, %s2440_s27  ;;  %v4683_v32 = vld [vmem:[#allocation77_spill] sm:$0xff]  ;;  %v1336_v22 = vsel %vm1307_vm4, %v1303_v28, %v3442_v20  ;;  %v1306_v5 = vsel %vm1274_vm3, %v4694_v15, %v4693_v11  ;;  %v1305_v20 = vsel %vm1274_vm3, %v4696_v43, %v4695_v60  ;;  %v4705_v60 = vld [vmem:[#allocation16_spill] sm:$0xff] }
 0x193   : > { %v725_v3 = vpop.permute.xlu1 %724  ;;  %v1302_v1 = vsel %vm1274_vm3, %v4684_v45, %v4683_v32  ;;  %v1338_v47 = vsel %vm1307_vm4, %v1305_v20, %v3450_v57  ;;  %v4699_v32 = vld [vmem:[#allocation13_spill] sm:$0xff]  ;;  %v4701_v57 = vld [vmem:[#allocation46_spill] sm:$0xff] }
 0x194   : > { %v3659_v17 = vsel %vm1340_vm5, %v1333_v52, %v725_v3  ;;  %v723_v48 = vpop.permute.xlu0 %722  ;;  %v1335_v63 = vsel %vm1307_vm4, %v1302_v1, %v3432_v27  ;;  %v4690_v27 = vld [vmem:[#allocation14_spill] sm:$0xff] }
 0x195   : > { %v3662_v0 = vsel %vm1340_vm5, %v1332_v19, %v723_v48  ;;  %1017 = vrot.lane.b32.xlu1 %v4681_v40, %s2440_s27  ;;  %v4697_v40 = vld [vmem:[#allocation26_spill] sm:$0xff]  ;;  %v4698_v48 = vld [vmem:[#allocation33_spill] sm:$0xff] }
 0x196   : > { %985 = vrot.lane.b32.xlu0 %v2727_v30, %s2440_s27  ;;  %v4687_v30 = vld [vmem:[#allocation34_spill] sm:$0xff]  ;;  %v1339_v59 = vsel %vm1307_vm4, %v1306_v5, %v4697_v40 }
 0x197   : > { %v729_v25 = vpop.permute.xlu1 %728  ;;  %v4704_v5 = vld [vmem:[#allocation38_spill] sm:$0xff] }
 0x198   : > { %v3679_v58 = vsel %vm1340_vm5, %v1335_v63, %v729_v25  ;;  %v727_v24 = vpop.permute.xlu0 %726  ;;  %v2256_v20 = vld [vmem:[%s2648_s6] sm:$0xff] }
 0x199   : > { %v3682_v23 = vsel %vm1340_vm5, %v1334_v50, %v727_v24  ;;  %1117 = vrot.lane.b32.xlu1 %v4687_v30, %s2441_s22  ;;  %v4706_v40 = vld [vmem:[#allocation62_spill] sm:$0xff] }
 0x19a   : > { %1085 = vrot.lane.b32.xlu0 %v4690_v27, %s2441_s22 }
 0x19b   : > { %v733_v10 = vpop.permute.xlu1 %732 }
 0x19c   : > { %v3699_v44 = vsel %vm1340_vm5, %v1337_v37, %v733_v10  ;;  %v731_v13 = vpop.permute.xlu0 %730  ;;  %v2254_v37 = vld [vmem:[%s2648_s6 + $0x78] sm:$0xff] }
 0x19d   : > { %v3702_v8 = vsel %vm1340_vm5, %v1336_v22, %v731_v13  ;;  %820 = vrot.lane.b32.xlu1 %v4687_v30, %s2438_s8  ;;  %v2255_v13 = vld [vmem:[%s2648_s6 + $0x80] sm:$0xff] }
 0x19e   : > { %788 = vrot.lane.b32.xlu0 %v4690_v27, %s2438_s8 }
 0x19f   : > { %v737_v9 = vpop.permute.xlu1 %736 }
 0x1a0   : > { %v3719_v52 = vsel %vm1340_vm5, %v1339_v59, %v737_v9  ;;  %v735_v3 = vpop.permute.xlu0 %734  ;;  %v1275_v59 = vsel %vm1274_vm3, %v2256_v20, %v4706_v40 }
 0x1a1   : > { %v3722_v19 = vsel %vm1340_vm5, %v1338_v47, %v735_v3  ;;  %1119 = vrot.lane.b32.xlu1 %v4698_v48, %s2441_s22 }
 0x1a2   : > { %1087 = vrot.lane.b32.xlu0 %v4699_v32, %s2441_s22 }
 0x1a3   : > { %v3728_v1 = vpop.permute.xlu1 %778 }
 0x1a4   : > { %v777_v51 = vpop.permute.xlu0 %776 }
 0x1a5   : > { %1218 = vrot.lane.b32.xlu1 %v4700_v7, %s2442_s29 }
 0x1a6   : > { %1186 = vrot.lane.b32.xlu0 %v4701_v57, %s2442_s29 }
 0x1a7   : > { %v3734_v63 = vpop.permute.xlu1 %782 }
 0x1a8   : > { %v3736_v25 = vpop.permute.xlu0 %780 }
 0x1a9   : > { %822 = vrot.lane.b32.xlu1 %v4698_v48, %s2438_s8 }
 0x1aa   : > { %790 = vrot.lane.b32.xlu0 %v4699_v32, %s2438_s8 }
 0x1ab   : > { %v3742_v50 = vpop.permute.xlu1 %786 }
 0x1ac   : > { %v3744_v24 = vpop.permute.xlu0 %784 }
 0x1ad   : > { %921 = vrot.lane.b32.xlu1 %v4700_v7, %s2439_s21 }
 0x1ae   : > { %889 = vrot.lane.b32.xlu0 %v4701_v57, %s2439_s21  ;;  %v4708_v57 = vld [vmem:[#allocation37_spill] sm:$0xff] }
 0x1af   : > { %v3750_v30 = vpop.permute.xlu1 %810 }
 0x1b0   : > { %v809_v29 = vpop.permute.xlu0 %808 }
 0x1b1   : > { %1220 = vrot.lane.b32.xlu1 %v4702_v55, %s2442_s29 }
 0x1b2   : > { %1188 = vrot.lane.b32.xlu0 %v4703_v62, %s2442_s29 }
 0x1b3   : > { %v910_v27 = vpop.permute.xlu1 %909 }
 0x1b4   : > { %v878_v42 = vpop.permute.xlu0 %877 }
 0x1b5   : > { %923 = vrot.lane.b32.xlu1 %v4702_v55, %s2439_s21  ;;  %v3796_v55 = vld [vmem:[%s2648_s6 + $0xc0] sm:$0xff] }
 0x1b6   : > { %891 = vrot.lane.b32.xlu0 %v4703_v62, %s2439_s21  ;;  %v4709_v62 = vld [vmem:[#allocation70_spill] sm:$0xff] }
 0x1b7   : > { %v3760_v36 = vpop.permute.xlu1 %911 }
 0x1b8   : > { %v3762_v28 = vpop.permute.xlu0 %879 }
 0x1b9   : > { %1019 = vrot.lane.b32.xlu1 %v4686_v12, %s2440_s27 }
 0x1ba   : > { %987 = vrot.lane.b32.xlu0 %v2254_v37, %s2440_s27  ;;  %v1291_v37 = vsel %vm1274_vm3, %v3796_v55, %v4709_v62  ;;  %v3822_v62 = vld [vmem:[%s2648_s6 + $0xc8] sm:$0xff] }
 0x1bb   : > { %v1008_v10 = vpop.permute.xlu1 %1007 }
 0x1bc   : > { %v976_v22 = vpop.permute.xlu0 %975 }
 0x1bd   : > { %1021 = vrot.lane.b32.xlu1 %v4684_v45, %s2440_s27  ;;  %v4707_v45 = vld [vmem:[#allocation84_spill] sm:$0xff] }
 0x1be   : > { %989 = vrot.lane.b32.xlu0 %v2255_v13, %s2440_s27  ;;  %v1308_v9 = vsel %vm1307_vm4, %v1275_v59, %v4707_v45  ;;  %v4710_v13 = vld [vmem:[#allocation15_spill] sm:$0xff]  ;;  %v4712_v45 = vld [vmem:[#allocation61_spill] sm:$0xff] }
 0x1bf   : > { %v1010_v11 = vpop.permute.xlu1 %1009  ;;  %v1341_v47 = vsel %vm1340_vm5, %v1308_v9, %v3458_v2 }
 0x1c0   : > { %v3772_v15 = vpop.permute.xlu0 %977  ;;  %v1374_v48 = vsel %vm1373_vm6, %v1341_v47, %v777_v51  ;;  %v4711_v51 = vld [vmem:[#allocation89_spill] sm:$0xff]  ;;  %v4713_v47 = vld [vmem:[#allocation48_spill] sm:$0xff] }
 0x1c1   : > { %1121 = vrot.lane.b32.xlu1 %v4704_v5, %s2441_s22  ;;  %v1407_v7 = vsel %vm1406_vm7, %v1374_v48, %v878_v42  ;;  %v1324_v42 = vsel %vm1307_vm4, %v1291_v37, %v4711_v51  ;;  %v4715_v51 = vld [vmem:[#allocation66_spill] sm:$0xff] }
 0x1c2   : > { %1089 = vrot.lane.b32.xlu0 %v4705_v60, %s2441_s22  ;;  %v1440_v2 = vsel %vm1439_vm8, %v1407_v7, %v976_v22  ;;  %v1357_v20 = vsel %vm1340_vm5, %v1324_v42, %v3594_v31  ;;  %v4716_v42 = vld [vmem:[#allocation12_spill] sm:$0xff] }
 0x1c3   : > { %v1110_v12 = vpop.permute.xlu1 %1109  ;;  %v1390_v22 = vsel %vm1373_vm6, %v1357_v20, %v809_v29  ;;  %v4714_v29 = vld [vmem:[#allocation69_spill] sm:$0xff] }
 0x1c4   : > { %v1078_v43 = vpop.permute.xlu0 %1077  ;;  %v1423_v9 = vsel %vm1406_vm7, %v1390_v22, %v910_v27  ;;  %v1292_v37 = vsel %vm1274_vm3, %v3822_v62, %v4714_v29 }
 0x1c5   : > { %824 = vrot.lane.b32.xlu1 %v4704_v5, %s2438_s8  ;;  %v1473_v5 = vsel %vm1472_vm9, %v1440_v2, %v1078_v43  ;;  %v1456_v43 = vsel %vm1439_vm8, %v1423_v9, %v1008_v10  ;;  %v2259_v2 = vld [vmem:[%s2648_s6 + $0x8] sm:$0xff] }
 0x1c6   : > { %792 = vrot.lane.b32.xlu0 %v4705_v60, %s2438_s8  ;;  %v1489_v31 = vsel %vm1472_vm9, %v1456_v43, %v1110_v12  ;;  %v1276_v10 = vsel %vm1274_vm3, %v2259_v2, %v4715_v51  ;;  %v4717_v12 = vld [vmem:[#allocation83_spill] sm:$0xff] }
 0x1c7   : > { %v1080_v3 = vpop.permute.xlu1 %1079  ;;  %v2260_v2 = vld [vmem:[%s2648_s6 + $0x150] sm:$0xff] }
 0x1c8   : > { %v3790_v32 = vpop.permute.xlu0 %812  ;;  %v2261_v51 = vld [vmem:[%s2648_s6 + $0x90] sm:$0xff] }
 0x1c9   : > { %1123 = vrot.lane.b32.xlu1 %v4708_v57, %s2441_s22 }
 0x1ca   : > { %1091 = vrot.lane.b32.xlu0 %v4710_v13, %s2441_s22 }
 0x1cb   : > { %v1179_v60 = vpop.permute.xlu1 %1178 }
 0x1cc   : > { %v1112_v40 = vpop.permute.xlu0 %1111  ;;  %v1506_v59 = vsel %vm1505_vm10, %v1473_v5, %v1179_v60  ;;  %v1325_v5 = vsel %vm1307_vm4, %v1292_v37, %v4716_v42  ;;  %v1309_v60 = vsel %vm1307_vm4, %v1276_v10, %v4717_v12  ;;  %v2263_v12 = vld [vmem:[%s2648_s6 + $0x98] sm:$0xff] }
 0x1cd   : > { %1222 = vrot.lane.b32.xlu1 %v4712_v45, %s2442_s29  ;;  %2111 = vmatprep.mubr.msk.f32.mxu0 %vm1550_vm11, %v1506_v59  ;;  %v4718_v59 = vld [vmem:[#allocation25_spill] sm:$0xff] }
 0x1ce   : > { %1190 = vrot.lane.b32.xlu0 %v4713_v47, %s2442_s29  ;;  %v1342_v22 = vsel %vm1340_vm5, %v1309_v60, %v4718_v59  ;;  %v2264_v59 = vld [vmem:[%s2648_s6 + $0x18] sm:$0xff] }
 0x1cf   : > { %v3818_v48 = vpop.permute.xlu1 %814 }
 0x1d0   : > { %v1211_v7 = vpop.permute.xlu0 %1210 }
 0x1d1   : > { %826 = vrot.lane.b32.xlu1 %v4708_v57, %s2438_s8  ;;  %v1522_v27 = vsel %vm1505_vm10, %v1489_v31, %v1211_v7  ;;  %v1358_v57 = vsel %vm1340_vm5, %v1325_v5, %v3592_v56  ;;  %v2262_v5 = vld [vmem:[%s2648_s6 + $0x158] sm:$0xff] }
 0x1d2   : > { %794 = vrot.lane.b32.xlu0 %v4710_v13, %s2438_s8  ;;  %2135 = vmatprep.mubr.msk.f32.mxu1 %vm1550_vm11, %v1522_v27  ;;  %v1391_v9 = vsel %vm1373_vm6, %v1358_v57, %v3750_v30  ;;  %v1375_v13 = vsel %vm1373_vm6, %v1342_v22, %v3728_v1  ;;  %v4721_v22 = vld [vmem:[#allocation60_spill] sm:$0xff] }
 0x1d3   : > { %v3842_v20 = vpop.permute.xlu1 %913  ;;  %v1424_v31 = vsel %vm1406_vm7, %v1391_v9, %v3760_v36  ;;  %v1408_v56 = vsel %vm1406_vm7, %v1375_v13, %v3762_v28  ;;  %v1277_v9 = vsel %vm1274_vm3, %v2264_v59, %v4721_v22  ;;  %v4722_v13 = vld [vmem:[#allocation42_spill] sm:$0xff] }
 0x1d4   : > { %v882_v43 = vpop.permute.xlu0 %881  ;;  %v1457_v7 = vsel %vm1439_vm8, %v1424_v31, %v1010_v11  ;;  %v1441_v30 = vsel %vm1439_vm8, %v1408_v56, %v3772_v15  ;;  %v4719_v11 = vld [vmem:[#allocation59_spill] sm:$0xff]  ;;  %v4723_v31 = vld [vmem:[#allocation86_spill] sm:$0xff] }
 0x1d5   : > { %925 = vrot.lane.b32.xlu1 %v4712_v45, %s2439_s21  ;;  %v1490_v29 = vsel %vm1472_vm9, %v1457_v7, %v1112_v40  ;;  %v1474_v36 = vsel %vm1472_vm9, %v1441_v30, %v1080_v3  ;;  %v4720_v15 = vld [vmem:[#allocation47_spill] sm:$0xff]  ;;  %v1310_v56 = vsel %vm1307_vm4, %v1277_v9, %v4723_v31  ;;  %v4724_v7 = vld [vmem:[#allocation18_spill] sm:$0xff]  ;;  %v4725_v30 = vld [vmem:[#allocation96_spill] sm:$0xff] }
 0x1d6   : > { %893 = vrot.lane.b32.xlu0 %v4713_v47, %s2439_s21  ;;  %v4728_v9 = vld [vmem:[#allocation41_spill] sm:$0xff] }
 0x1d7   : > { %v1213_v1 = vpop.permute.xlu1 %1212 }
 0x1d8   : > { %v1523_v45 = vsel %vm1505_vm10, %v1490_v29, %v1213_v1  ;;  %v1181_v37 = vpop.permute.xlu0 %1180  ;;  %v1343_v29 = vsel %vm1340_vm5, %v1310_v56, %v4725_v30  ;;  %v3934_v30 = vld [vmem:[%s2648_s6 + $0xe0] sm:$0xff] }
 0x1d9   : > { %v1507_v28 = vsel %vm1505_vm10, %v1474_v36, %v1181_v37  ;;  %1224 = vrot.lane.b32.xlu1 %v4719_v11, %s2442_s29  ;;  %2136 = vmatmul.mubr.msk.f32.vlgmr.msra.gmra.mrb[0].mxu1 %vm1550_vm11, %v1523_v45  ;;  %v1376_v36 = vsel %vm1373_vm6, %v1343_v29, %v3736_v25 }
 0x1da   : > { %1192 = vrot.lane.b32.xlu0 %v4720_v15, %s2442_s29  ;;  %2112 = vmatmul.mubr.msk.f32.vlgmr.msra.gmra.mrb[0].mxu0 %vm1550_vm11, %v1507_v28  ;;  %v1409_v37 = vsel %vm1406_vm7, %v1376_v36, %v882_v43  ;;  %v3906_v28 = vld [vmem:[%s2648_s6 + $0xd8] sm:$0xff] }
 0x1db   : > { %v3871_v40 = vpop.permute.xlu1 %915 }
 0x1dc   : > { %v3873_v3 = vpop.permute.xlu0 %883 }
 0x1dd   : > { %927 = vrot.lane.b32.xlu1 %v4719_v11, %s2439_s21  ;;  %v4726_v11 = vld [vmem:[#allocation72_spill] sm:$0xff] }
 0x1de   : > { %895 = vrot.lane.b32.xlu0 %v4720_v15, %s2439_s21  ;;  %v1293_v15 = vsel %vm1274_vm3, %v3906_v28, %v4726_v11  ;;  %v4732_v11 = vld [vmem:[#allocation64_spill] sm:$0xff] }
 0x1df   : > { %v1012_v47 = vpop.permute.xlu1 %1011 }
 0x1e0   : > { %v980_v27 = vpop.permute.xlu0 %979 }
 0x1e1   : > { %1023 = vrot.lane.b32.xlu1 %v2260_v2, %s2440_s27  ;;  %v1442_v2 = vsel %vm1439_vm8, %v1409_v37, %v980_v27  ;;  %v2267_v37 = vld [vmem:[%s2648_s6 + $0x20] sm:$0xff] }
 0x1e2   : > { %991 = vrot.lane.b32.xlu0 %v2261_v51, %s2440_s27  ;;  %v4727_v51 = vld [vmem:[#allocation91_spill] sm:$0xff] }
 0x1e3   : > { %v1014_v10 = vpop.permute.xlu1 %1013  ;;  %v1326_v25 = vsel %vm1307_vm4, %v1293_v15, %v4727_v51  ;;  %v4733_v15 = vld [vmem:[#allocation90_spill] sm:$0xff]  ;;  %v4735_v51 = vld [vmem:[#allocation85_spill] sm:$0xff] }
 0x1e4   : > { %v982_v42 = vpop.permute.xlu0 %981 }
 0x1e5   : > { %1025 = vrot.lane.b32.xlu1 %v2262_v5, %s2440_s27 }
 0x1e6   : > { %993 = vrot.lane.b32.xlu0 %v2263_v12, %s2440_s27  ;;  %v1359_v12 = vsel %vm1340_vm5, %v1326_v25, %v3602_v39 }
 0x1e7   : > { %v1114_v60 = vpop.permute.xlu1 %1113  ;;  %v1392_v27 = vsel %vm1373_vm6, %v1359_v12, %v3790_v32  ;;  %v4730_v32 = vld [vmem:[#allocation71_spill] sm:$0xff] }
 0x1e8   : > { %v1082_v57 = vpop.permute.xlu0 %1081  ;;  %v1294_v29 = vsel %vm1274_vm3, %v3934_v30, %v4730_v32  ;;  %v4736_v12 = vld [vmem:[#allocation95_spill] sm:$0xff] }
 0x1e9   : > { %1125 = vrot.lane.b32.xlu1 %v4722_v13, %s2441_s22  ;;  %v1475_v43 = vsel %vm1472_vm9, %v1442_v2, %v1082_v57  ;;  %v4729_v57 = vld [vmem:[#allocation17_spill] sm:$0xff]  ;;  %v1327_v2 = vsel %vm1307_vm4, %v1294_v29, %v4733_v15 }
 0x1ea   : > { %1093 = vrot.lane.b32.xlu0 %v4724_v7, %s2441_s22 }
 0x1eb   : > { %v1084_v1 = vpop.permute.xlu1 %1083 }
 0x1ec   : > { %v3900_v45 = vpop.permute.xlu0 %816 }
 0x1ed   : > { %828 = vrot.lane.b32.xlu1 %v4722_v13, %s2438_s8  ;;  %v1425_v13 = vsel %vm1406_vm7, %v1392_v27, %v3842_v20  ;;  %v4731_v20 = vld [vmem:[#allocation65_spill] sm:$0xff] }
 0x1ee   : > { %796 = vrot.lane.b32.xlu0 %v4724_v7, %s2438_s8  ;;  %v1458_v39 = vsel %vm1439_vm8, %v1425_v13, %v1012_v47  ;;  %v1278_v47 = vsel %vm1274_vm3, %v2267_v37, %v4732_v11  ;;  %v2268_v11 = vld [vmem:[%s2648_s6 + $0x168] sm:$0xff] }
 0x1ef   : > { %v1183_v5 = vpop.permute.xlu1 %1182  ;;  %v1491_v56 = vsel %vm1472_vm9, %v1458_v39, %v1114_v60  ;;  %v4734_v60 = vld [vmem:[#allocation50_spill] sm:$0xff]  ;;  %v1311_v25 = vsel %vm1307_vm4, %v1278_v47, %v4735_v51 }
 0x1f0   : > { %v1508_v59 = vsel %vm1505_vm10, %v1475_v43, %v1183_v5  ;;  %v1116_v22 = vpop.permute.xlu0 %1115  ;;  %v1360_v43 = vsel %vm1340_vm5, %v1327_v2, %v3600_v26  ;;  %v2269_v47 = vld [vmem:[%s2648_s6 + $0xa8] sm:$0xff]  ;;  %v2271_v51 = vld [vmem:[%s2648_s6 + $0xb0] sm:$0xff] }
 0x1f1   : > { %1127 = vrot.lane.b32.xlu1 %v4728_v9, %s2441_s22  ;;  %2114 = vmatprep.mubr.msk.f32.mxu0 %vm1550_vm11, %v1508_v59  ;;  %v1344_v59 = vsel %vm1340_vm5, %v1311_v25, %v4736_v12  ;;  %v1393_v27 = vsel %vm1373_vm6, %v1360_v43, %v3818_v48  ;;  %v4739_v12 = vld [vmem:[#allocation44_spill] sm:$0xff] }
 0x1f2   : > { %1095 = vrot.lane.b32.xlu0 %v4729_v57, %s2441_s22  ;;  %v1377_v39 = vsel %vm1373_vm6, %v1344_v59, %v3734_v63  ;;  %v4740_v59 = vld [vmem:[#allocation20_spill] sm:$0xff] }
 0x1f3   : > { %v3930_v31 = vpop.permute.xlu1 %818  ;;  %v1410_v26 = vsel %vm1406_vm7, %v1377_v39, %v3873_v3  ;;  %v1394_v39 = vsel %vm1373_vm6, %v3622_v34, %v3900_v45 }
 0x1f4   : > { %v1215_v7 = vpop.permute.xlu0 %1214  ;;  %v1443_v48 = vsel %vm1439_vm8, %v1410_v26, %v982_v42  ;;  %v4737_v42 = vld [vmem:[#allocation63_spill] sm:$0xff]  ;;  %v1378_v26 = vsel %vm1373_vm6, %v3486_v21, %v3744_v24 }
 0x1f5   : > { %v1524_v36 = vsel %vm1505_vm10, %v1491_v56, %v1215_v7  ;;  %1226 = vrot.lane.b32.xlu1 %v4731_v20, %s2442_s29  ;;  %v1426_v56 = vsel %vm1406_vm7, %v1393_v27, %v3871_v40  ;;  %v1476_v63 = vsel %vm1472_vm9, %v1443_v48, %v1084_v1  ;;  %v4738_v1 = vld [vmem:[#allocation49_spill] sm:$0xff] }
 0x1f6   : > { %1194 = vrot.lane.b32.xlu0 %v4734_v60, %s2442_s29  ;;  %2138 = vmatprep.mubr.msk.f32.mxu1 %vm1550_vm11, %v1524_v36  ;;  %v1459_v7 = vsel %vm1439_vm8, %v1426_v56, %v1014_v10 }
 0x1f7   : > { %v918_v5 = vpop.permute.xlu1 %917  ;;  %v1492_v32 = vsel %vm1472_vm9, %v1459_v7, %v1116_v22 }
 0x1f8   : > { %v886_v13 = vpop.permute.xlu0 %885  ;;  %v1427_v7 = vsel %vm1406_vm7, %v1394_v39, %v918_v5 }
 0x1f9   : > { %830 = vrot.lane.b32.xlu1 %v4728_v9, %s2438_s8  ;;  %v1411_v48 = vsel %vm1406_vm7, %v1378_v26, %v886_v13  ;;  %v4742_v13 = vld [vmem:[#allocation19_spill] sm:$0xff] }
 0x1fa   : > { %798 = vrot.lane.b32.xlu0 %v4729_v57, %s2438_s8 }
 0x1fb   : > { %v1217_v29 = vpop.permute.xlu1 %1216 }
 0x1fc   : > { %v1525_v40 = vsel %vm1505_vm10, %v1492_v32, %v1217_v29  ;;  %v1185_v36 = vpop.permute.xlu0 %1184 }
 0x1fd   : > { %v1509_v9 = vsel %vm1505_vm10, %v1476_v63, %v1185_v36  ;;  %929 = vrot.lane.b32.xlu1 %v4731_v20, %s2439_s21  ;;  %2139 = vmatmul.mubr.msk.f32.gmra.mrb[2].mxu1 %vm1550_vm11, %v1525_v40  ;;  %v4741_v40 = vld [vmem:[#allocation43_spill] sm:$0xff] }
 0x1fe   : > { %897 = vrot.lane.b32.xlu0 %v4734_v60, %s2439_s21  ;;  %2115 = vmatmul.mubr.msk.f32.gmra.mrb[2].mxu0 %vm1550_vm11, %v1509_v9  ;;  %v2270_v60 = vld [vmem:[%s2648_s6 + $0x170] sm:$0xff] }
 0x1ff   : > { %v920_v3 = vpop.permute.xlu1 %919 }
 0x200   : > { %v888_v10 = vpop.permute.xlu0 %887 }
 0x201   : > { %1228 = vrot.lane.b32.xlu1 %v4737_v42, %s2442_s29 }
 0x202   : > { %1196 = vrot.lane.b32.xlu0 %v4738_v1, %s2442_s29 }
 0x203   : > { %v1016_v22 = vpop.permute.xlu1 %1015 }
 0x204   : > { %v984_v57 = vpop.permute.xlu0 %983  ;;  %v1460_v32 = vsel %vm1439_vm8, %v1427_v7, %v1016_v22  ;;  %v4747_v7 = vld [vmem:[#allocation88_spill] sm:$0xff] }
 0x205   : > { %931 = vrot.lane.b32.xlu1 %v4737_v42, %s2439_s21  ;;  %v1444_v29 = vsel %vm1439_vm8, %v1411_v48, %v984_v57  ;;  %v4743_v42 = vld [vmem:[#allocation68_spill] sm:$0xff]  ;;  %v1395_v57 = vsel %vm1373_vm6, %v3619_v14, %v3930_v31  ;;  %v4748_v48 = vld [vmem:[#allocation87_spill] sm:$0xff] }
 0x206   : > { %899 = vrot.lane.b32.xlu0 %v4738_v1, %s2439_s21  ;;  %v4744_v1 = vld [vmem:[#allocation52_spill] sm:$0xff] }
 0x207   : > { %v1018_v20 = vpop.permute.xlu1 %1017 }
 0x208   : > { %v986_v37 = vpop.permute.xlu0 %985 }
 0x209   : > { %1027 = vrot.lane.b32.xlu1 %v2268_v11, %s2440_s27 }
 0x20a   : > { %995 = vrot.lane.b32.xlu0 %v2269_v47, %s2440_s27  ;;  %v1379_v47 = vsel %vm1373_vm6, %v3483_v49, %v3742_v50 }
 0x20b   : > { %v1118_v15 = vpop.permute.xlu1 %1117 }
 0x20c   : > { %v1086_v2 = vpop.permute.xlu0 %1085  ;;  %v1493_v34 = vsel %vm1472_vm9, %v1460_v32, %v1118_v15  ;;  %v1428_v15 = vsel %vm1406_vm7, %v1395_v57, %v920_v3  ;;  %v772_v32 = vrot.slane %v4748_v48, 1 }
 0x20d   : > { %1029 = vrot.lane.b32.xlu1 %v2270_v60, %s2440_s27  ;;  %v1477_v63 = vsel %vm1472_vm9, %v1444_v29, %v1086_v2  ;;  %v1412_v2 = vsel %vm1406_vm7, %v1379_v47, %v888_v10  ;;  %v1461_v60 = vsel %vm1439_vm8, %v1428_v15, %v1018_v20  ;;  %v771_v29 = vrot.slane %v4747_v7, 1 }
 0x20e   : > { %997 = vrot.lane.b32.xlu0 %v2271_v51, %s2440_s27  ;;  %v1445_v51 = vsel %vm1439_vm8, %v1412_v2, %v986_v37  ;;  %v4745_v37 = vld [vmem:[#allocation67_spill] sm:$0xff]  ;;  %v872_v15 = vrot.slane %v4747_v7, 2 }
 0x20f   : > { %v3996_v25 = vpop.permute.xlu1 %820 }
 0x210   : > { %v3998_v43 = vpop.permute.xlu0 %788 }
 0x211   : > { %1129 = vrot.lane.b32.xlu1 %v4739_v12, %s2441_s22  ;;  %v1380_v57 = vsel %vm1373_vm6, %v3506_v61, %v3998_v43 }
 0x212   : > { %1097 = vrot.lane.b32.xlu0 %v4740_v59, %s2441_s22 }
 0x213   : > { %v1120_v27 = vpop.permute.xlu1 %1119 }
 0x214   : > { %v1088_v56 = vpop.permute.xlu0 %1087  ;;  %v1494_v14 = vsel %vm1472_vm9, %v1461_v60, %v1120_v27 }
 0x215   : > { %832 = vrot.lane.b32.xlu1 %v4739_v12, %s2438_s8  ;;  %v1478_v12 = vsel %vm1472_vm9, %v1445_v51, %v1088_v56 }
 0x216   : > { %800 = vrot.lane.b32.xlu0 %v4740_v59, %s2438_s8  ;;  %v4746_v59 = vld [vmem:[#allocation51_spill] sm:$0xff] }
 0x217   : > { %v1219_v45 = vpop.permute.xlu1 %1218 }
 0x218   : > { %v1526_v21 = vsel %vm1505_vm10, %v1493_v34, %v1219_v45  ;;  %v1187_v24 = vpop.permute.xlu0 %1186 }
 0x219   : > { %v1510_v5 = vsel %vm1505_vm10, %v1477_v63, %v1187_v24  ;;  %1131 = vrot.lane.b32.xlu1 %v4741_v40, %s2441_s22  ;;  %2141 = vmatprep.mubr.msk.f32.mxu1 %vm1550_vm11, %v1526_v21  ;;  %v773_v63 = vsel %vm318_vm0, %v771_v29, %v772_v32  ;;  %v266_v24 = vld [vmem:[%s2648_s6 + $0x190] sm:$0x3] }
 0x21a   : > { %1099 = vrot.lane.b32.xlu0 %v4742_v13, %s2441_s22  ;;  %2117 = vmatprep.mubr.msk.f32.mxu0 %vm1550_vm11, %v1510_v5  ;;  %v875_v29 = vrot.slane %v266_v24, 2 }
 0x21b   : > { %v4028_v36 = vpop.permute.xlu1 %822 }
 0x21c   : > { %v4030_v9 = vpop.permute.xlu0 %790 }
 0x21d   : > { %1230 = vrot.lane.b32.xlu1 %v4743_v42, %s2442_s29 }
 0x21e   : > { %1198 = vrot.lane.b32.xlu0 %v4744_v1, %s2442_s29 }
 0x21f   : > { %v922_v22 = vpop.permute.xlu1 %921 }
 0x220   : > { %v890_v11 = vpop.permute.xlu0 %889 }
 0x221   : > { %834 = vrot.lane.b32.xlu1 %v4741_v40, %s2438_s8  ;;  %v4749_v40 = vld [vmem:[#allocation22_spill] sm:$0xff]  ;;  %v1413_v2 = vsel %vm1406_vm7, %v1380_v57, %v890_v11  ;;  %v4750_v11 = vld [vmem:[#allocation21_spill] sm:$0xff] }
 0x222   : > { %802 = vrot.lane.b32.xlu0 %v4742_v13, %s2438_s8 }
 0x223   : > { %v1221_v31 = vpop.permute.xlu1 %1220 }
 0x224   : > { %v1527_v49 = vsel %vm1505_vm10, %v1494_v14, %v1221_v31  ;;  %v1189_v50 = vpop.permute.xlu0 %1188 }
 0x225   : > { %v1511_v3 = vsel %vm1505_vm10, %v1478_v12, %v1189_v50  ;;  %933 = vrot.lane.b32.xlu1 %v4743_v42, %s2439_s21  ;;  %2142 = vmatmul.mubr.msk.f32.gmra.mrb[4].mxu1 %vm1550_vm11, %v1527_v49  ;;  %v1396_v42 = vsel %vm1373_vm6, %v3642_v53, %v3996_v25 }
 0x226   : > { %901 = vrot.lane.b32.xlu0 %v4744_v1, %s2439_s21  ;;  %2118 = vmatmul.mubr.msk.f32.gmra.mrb[4].mxu0 %vm1550_vm11, %v1511_v3  ;;  %v1429_v47 = vsel %vm1406_vm7, %v1396_v42, %v922_v22  ;;  %v4751_v3 = vld [vmem:[#allocation54_spill] sm:$0xff] }
 0x227   : > { %v924_v10 = vpop.permute.xlu1 %923  ;;  %v268_v42 = vld [vmem:[%s2648_s6 + $0x1a0] sm:$0xff] }
 0x228   : > { %v892_v20 = vpop.permute.xlu0 %891  ;;  %v1073_v57 = vrot.slane %v268_v42, 1 }
 0x229   : > { %1232 = vrot.lane.b32.xlu1 %v4745_v37, %s2442_s29 }
 0x22a   : > { %1200 = vrot.lane.b32.xlu0 %v4746_v59, %s2442_s29 }
 0x22b   : > { %v1020_v27 = vpop.permute.xlu1 %1019 }
 0x22c   : > { %v988_v39 = vpop.permute.xlu0 %987  ;;  %v1462_v60 = vsel %vm1439_vm8, %v1429_v47, %v1020_v27 }
 0x22d   : > { %935 = vrot.lane.b32.xlu1 %v4745_v37, %s2439_s21  ;;  %v1446_v25 = vsel %vm1439_vm8, %v1413_v2, %v988_v39  ;;  %v1381_v39 = vsel %vm1373_vm6, %v3503_v18, %v4030_v9 }
 0x22e   : > { %903 = vrot.lane.b32.xlu0 %v4746_v59, %s2439_s21  ;;  %v1397_v59 = vsel %vm1373_vm6, %v3639_v4, %v4028_v36 }
 0x22f   : > { %v1022_v56 = vpop.permute.xlu1 %1021 }
 0x230   : > { %v990_v26 = vpop.permute.xlu0 %989 }
 0x231   : > { %1031 = vrot.lane.b32.xlu1 %v4747_v7, %s2440_s27  ;;  %v1430_v7 = vsel %vm1406_vm7, %v1397_v59, %v924_v10 }
 0x232   : > { %999 = vrot.lane.b32.xlu0 %v3796_v55, %s2440_s27  ;;  %v774_v55 = vrot.slane %v266_v24, 1 }
 0x233   : > { %v1122_v34 = vpop.permute.xlu1 %1121 }
 0x234   : > { %v1090_v45 = vpop.permute.xlu0 %1089  ;;  %v775_v53 = vsel %vm318_vm0, %v772_v32, %v774_v55  ;;  %v1495_v51 = vsel %vm1472_vm9, %v1462_v60, %v1122_v34  ;;  %v1463_v32 = vsel %vm1439_vm8, %v1430_v7, %v1022_v56  ;;  %v267_v55 = vld [vmem:[%s2648_s6 + $0x198] sm:$0xff] }
 0x235   : > { %1033 = vrot.lane.b32.xlu1 %v4748_v48, %s2440_s27  ;;  %v1479_v43 = vsel %vm1472_vm9, %v1446_v25, %v1090_v45 }
 0x236   : > { %1001 = vrot.lane.b32.xlu0 %v3822_v62, %s2440_s27  ;;  %v873_v62 = vrot.slane %v4748_v48, 2  ;;  %v1414_v48 = vsel %vm1406_vm7, %v1381_v39, %v892_v20  ;;  %v4754_v39 = vld [vmem:[#allocation23_spill] sm:$0xff] }
 0x237   : > { %v4079_v21 = vpop.permute.xlu1 %824  ;;  %v1447_v34 = vsel %vm1439_vm8, %v1414_v48, %v990_v26 }
 0x238   : > { %v4082_v5 = vpop.permute.xlu0 %792  ;;  %v874_v12 = vsel %vm495_vm1, %v872_v15, %v873_v62  ;;  %v876_v20 = vsel %vm495_vm1, %v873_v62, %v875_v29  ;;  %v1072_v62 = vrot.slane %v267_v55, 1  ;;  %v269_v15 = vld [vmem:[%s2648_s6 + $0x1a8] sm:$0x3]  ;;  %v4755_v29 = vld [vmem:[#allocation56_spill] sm:$0xff]  ;;  %s2443_s6 = smov [#allocation8]  }
 0x239   : > { %1133 = vrot.lane.b32.xlu1 %v773_v63, %s2441_s22  ;;  %v1176_v48 = vrot.slane %v269_v15, 2  ;;  %s2362_s18 = sshll.u32 %s2443_s6, 4  ;;  %s2363_s18 = int_to_ptr.vmem [resolvable:$false] %s2362_s18 }
 0x23a   : > { %1101 = vrot.lane.b32.xlu0 %v4749_v40, %s2441_s22  ;;  %v1074_v60 = vsel %vm318_vm0, %v1072_v62, %v1073_v57  ;;  %s2364_s7 = scalar_lea.vmem %s2363_s18, 8192  ;;  %p2365_p7 = scmp.lt.s32.totalorder %s4407_s17, %s2363_s18 }
 0x23b   : > { %v1124_v13 = vpop.permute.xlu1 %1123  ;;  %p2366_p9 = scmp.lt.s32.totalorder %s2364_s7, %s2358_s23 }
 0x23c   : > { %v1092_v1 = vpop.permute.xlu0 %1091  ;;  %v1496_v4 = vsel %vm1472_vm9, %v1463_v32, %v1124_v13 }
 0x23d   : > { %836 = vrot.lane.b32.xlu1 %v773_v63, %s2438_s8  ;;  %v1480_v45 = vsel %vm1472_vm9, %v1447_v34, %v1092_v1  ;;  %v4752_v63 = vld [vmem:[#allocation53_spill] sm:$0xff]  ;;  %p2367_p12 = por %p2366_p9, %p2365_p7 }
 0x23e   : > { %804 = vrot.lane.b32.xlu0 %v4749_v40, %s2438_s8 }
 0x23f   : > { %v1223_v61 = vpop.permute.xlu1 %1222  ;;  %p2368_p1 = pnand %p2367_p12, %p2361_p3 }
 0x240   : > { %v1528_v22 = vsel %vm1505_vm10, %v1495_v51, %v1223_v61  ;;  %v1191_v14 = vpop.permute.xlu0 %1190  ;;  %v1173_v61 = vrot.slane %v267_v55, 2 }
 0x241   : > { %v1512_v31 = vsel %vm1505_vm10, %v1479_v43, %v1191_v14  ;;  %1135 = vrot.lane.b32.xlu1 %v775_v53, %s2441_s22  ;;  %2144 = vmatprep.mubr.msk.f32.mxu1 %vm1550_vm11, %v1528_v22  ;;  %v1174_v43 = vrot.slane %v268_v42, 2 }
 0x242   : > { %1103 = vrot.lane.b32.xlu0 %v4750_v11, %s2441_s22  ;;  %2120 = vmatprep.mubr.msk.f32.mxu0 %vm1550_vm11, %v1512_v31 }
 0x243   : > { %v4113_v49 = vpop.permute.xlu1 %826  ;;  %v1175_v7 = vsel %vm495_vm1, %v1173_v61, %v1174_v43  ;;  %v1177_v34 = vsel %vm495_vm1, %v1174_v43, %v1176_v48 }
 0x244   : > { %v4115_v50 = vpop.permute.xlu0 %794 }
 0x245   : > { %1234 = vrot.lane.b32.xlu1 %v874_v12, %s2442_s29 }
 0x246   : > { %1202 = vrot.lane.b32.xlu0 %v4751_v3, %s2442_s29 }
 0x247   : > { %v926_v37 = vpop.permute.xlu1 %925 }
 0x248   : > { %v894_v27 = vpop.permute.xlu0 %893 }
 0x249   : > { %838 = vrot.lane.b32.xlu1 %v775_v53, %s2438_s8  ;;  %v1075_v53 = vrot.slane %v269_v15, 1 }
 0x24a   : > { %806 = vrot.lane.b32.xlu0 %v4750_v11, %s2438_s8  ;;  %v1382_v11 = vsel %vm1373_vm6, %v3526_v6, %v4082_v5 }
 0x24b   : > { %v1225_v36 = vpop.permute.xlu1 %1224  ;;  %v1076_v22 = vsel %vm318_vm0, %v1073_v57, %v1075_v53 }
 0x24c   : > { %v1529_v18 = vsel %vm1505_vm10, %v1496_v4, %v1225_v36  ;;  %v1193_v9 = vpop.permute.xlu0 %1192 }
 0x24d   : > { %v1513_v10 = vsel %vm1505_vm10, %v1480_v45, %v1193_v9  ;;  %937 = vrot.lane.b32.xlu1 %v874_v12, %s2439_s21  ;;  %2145 = vmatmul.mubr.msk.f32.gmra.mrb[6].mxu1 %vm1550_vm11, %v1529_v18  ;;  %v4756_v45 = vld [vmem:[#allocation55_spill] sm:$0xff]  ;;  %v1399_v9 = vsel %vm1373_vm6, %v3659_v17, %v4113_v49 }
 0x24e   : > { %905 = vrot.lane.b32.xlu0 %v4751_v3, %s2439_s21  ;;  %2121 = vmatmul.mubr.msk.f32.gmra.mrb[6].mxu0 %vm1550_vm11, %v1513_v10  ;;  %v1415_v3 = vsel %vm1406_vm7, %v1382_v11, %v894_v27 }
 0x24f   : > { %v928_v56 = vpop.permute.xlu1 %927 }
 0x250   : > { %v896_v26 = vpop.permute.xlu0 %895 }
 0x251   : > { %1236 = vrot.lane.b32.xlu1 %v876_v20, %s2442_s29 }
 0x252   : > { %1204 = vrot.lane.b32.xlu0 %v4752_v63, %s2442_s29 }
 0x253   : > { %v1024_v24 = vpop.permute.xlu1 %1023 }
 0x254   : > { %v992_v40 = vpop.permute.xlu0 %991 }
 0x255   : > { %939 = vrot.lane.b32.xlu1 %v876_v20, %s2439_s21  ;;  %v1383_v20 = vsel %vm1373_vm6, %v3523_v35, %v4115_v50 }
 0x256   : > { %907 = vrot.lane.b32.xlu0 %v4752_v63, %s2439_s21  ;;  %v1432_v63 = vsel %vm1406_vm7, %v1399_v9, %v928_v56 }
 0x257   : > { %v1026_v13 = vpop.permute.xlu1 %1025 }
 0x258   : > { %v994_v1 = vpop.permute.xlu0 %993 }
 0x259   : > { %1035 = vrot.lane.b32.xlu1 %v267_v55, %s2440_s27 }
 0x25a   : > { %1003 = vrot.lane.b32.xlu0 %v3906_v28, %s2440_s27  ;;  %v4753_v28 = vld [vmem:[#allocation24_spill] sm:$0xff] }
 0x25b   : > { %v1126_v47 = vpop.permute.xlu1 %1125 }
 0x25c   : > { %v1094_v2 = vpop.permute.xlu0 %1093 }
 0x25d   : > { %1037 = vrot.lane.b32.xlu1 %v268_v42, %s2440_s27 }
 0x25e   : > { %1005 = vrot.lane.b32.xlu0 %v3934_v30, %s2440_s27  ;;  %v1398_v30 = vsel %vm1373_vm6, %v3662_v0, %v4079_v21  ;;  %v1448_v0 = vsel %vm1439_vm8, %v1415_v3, %v992_v40  ;;  %v1465_v40 = vsel %vm1439_vm8, %v1432_v63, %v1026_v13  ;;  %v4246_v63 = vld [vmem:[#allocation7] ss:$0 sm:$0xff] }
 0x25f   : > { %v829_v25 = vpop.permute.xlu1 %828  ;;  %v1431_v12 = vsel %vm1406_vm7, %v1398_v30, %v926_v37  ;;  %v1481_v6 = vsel %vm1472_vm9, %v1448_v0, %v1094_v2 }
 0x260   : > { %v4159_v51 = vpop.permute.xlu0 %796  ;;  %v1464_v59 = vsel %vm1439_vm8, %v1431_v12, %v1024_v24  ;;  %v1416_v24 = vsel %vm1406_vm7, %v1383_v20, %v896_v26  ;;  %v1400_v43 = vsel %vm1373_vm6, %v3682_v23, %v829_v25 }
 0x261   : > { %1137 = vrot.lane.b32.xlu1 %v1074_v60, %s2441_s22  ;;  %v1497_v21 = vsel %vm1472_vm9, %v1464_v59, %v1126_v47  ;;  %v1449_v55 = vsel %vm1439_vm8, %v1416_v24, %v994_v1 }
 0x262   : > { %1105 = vrot.lane.b32.xlu0 %v4753_v28, %s2441_s22 }
 0x263   : > { %v1128_v14 = vpop.permute.xlu1 %1127 }
 0x264   : > { %v1096_v31 = vpop.permute.xlu0 %1095  ;;  %v1498_v42 = vsel %vm1472_vm9, %v1465_v40, %v1128_v14 }
 0x265   : > { %1139 = vrot.lane.b32.xlu1 %v1076_v22, %s2441_s22  ;;  %v1482_v57 = vsel %vm1472_vm9, %v1449_v55, %v1096_v31  ;;  %v1384_v22 = vsel %vm1373_vm6, %v3546_v38, %v4159_v51 }
 0x266   : > { %1107 = vrot.lane.b32.xlu0 %v4754_v39, %s2441_s22 }
 0x267   : > { %v1227_v32 = vpop.permute.xlu1 %1226 }
 0x268   : > { %v1530_v5 = vsel %vm1505_vm10, %v1497_v21, %v1227_v32  ;;  %v1195_v37 = vpop.permute.xlu0 %1194 }
 0x269   : > { %v1514_v27 = vsel %vm1505_vm10, %v1481_v6, %v1195_v37  ;;  %1238 = vrot.lane.b32.xlu1 %v1175_v7, %s2442_s29  ;;  %2147 = vmatprep.mubr.msk.f32.mxu1 %vm1550_vm11, %v1530_v5 }
 0x26a   : > { %1206 = vrot.lane.b32.xlu0 %v4755_v29, %s2442_s29  ;;  %2123 = vmatprep.mubr.msk.f32.mxu0 %vm1550_vm11, %v1514_v27 }
 0x26b   : > { %v831_v4 = vpop.permute.xlu1 %830 }
 0x26c   : > { %v799_v36 = vpop.permute.xlu0 %798  ;;  %v1401_v48 = vsel %vm1373_vm6, %v3679_v58, %v831_v4 }
 0x26d   : > { %1240 = vrot.lane.b32.xlu1 %v1177_v34, %s2442_s29  ;;  %v1385_v21 = vsel %vm1373_vm6, %v3543_v41, %v799_v36 }
 0x26e   : > { %1208 = vrot.lane.b32.xlu0 %v4756_v45, %s2442_s29 }
 0x26f   : > { %v930_v18 = vpop.permute.xlu1 %929 }
 0x270   : > { %v898_v10 = vpop.permute.xlu0 %897  ;;  %v1433_v14 = vsel %vm1406_vm7, %v1400_v43, %v930_v18 }
 0x271   : > { %v1417_v30 = vsel %vm1406_vm7, %v1384_v22, %v898_v10 }
 0x273   : > { %v1229_v62 = vpop.permute.xlu1 %1228 }
 0x274   : > { %v1531_v17 = vsel %vm1505_vm10, %v1498_v42, %v1229_v62  ;;  %v1197_v49 = vpop.permute.xlu0 %1196 }
 0x275   : > { %v1515_v47 = vsel %vm1505_vm10, %v1482_v57, %v1197_v49  ;;  %2148 = vmatmul.mubr.msk.f32.gmra.mrb[8].mxu1 %vm1550_vm11, %v1531_v17 }
 0x276   : > { %2124 = vmatmul.mubr.msk.f32.gmra.mrb[8].mxu0 %vm1550_vm11, %v1515_v47 }
 0x277   : > { %v932_v35 = vpop.permute.xlu1 %931 }
 0x278   : > { %v900_v50 = vpop.permute.xlu0 %899  ;;  %v1434_v32 = vsel %vm1406_vm7, %v1401_v48, %v932_v35 }
 0x279   : > { %v1418_v6 = vsel %vm1406_vm7, %v1385_v21, %v900_v50 }
 0x27b   : > { %v1028_v56 = vpop.permute.xlu1 %1027 }
 0x27c   : > { %v996_v26 = vpop.permute.xlu0 %995  ;;  %v1466_v31 = vsel %vm1439_vm8, %v1433_v14, %v1028_v56 }
 0x27d   : > { %v1450_v11 = vsel %vm1439_vm8, %v1417_v30, %v996_v26 }
 0x27f   : > { %v1030_v13 = vpop.permute.xlu1 %1029 }
 0x280   : > { %v998_v1 = vpop.permute.xlu0 %997  ;;  %v1467_v5 = vsel %vm1439_vm8, %v1434_v32, %v1030_v13 }
 0x281   : > { %v1451_v37 = vsel %vm1439_vm8, %v1418_v6, %v998_v1 }
 0x283   : > { %v1130_v15 = vpop.permute.xlu1 %1129 }
 0x284   : > { %v1098_v2 = vpop.permute.xlu0 %1097  ;;  %v1499_v12 = vsel %vm1472_vm9, %v1466_v31, %v1130_v15 }
 0x285   : > { %v1483_v59 = vsel %vm1472_vm9, %v1450_v11, %v1098_v2 }
 0x287   : > { %v4208_v60 = vpop.permute.xlu1 %832 }
 0x288   : > { %v4210_v53 = vpop.permute.xlu0 %800  ;;  %v1402_v13 = vsel %vm1373_vm6, %v3702_v8, %v4208_v60 }
 0x289   : > { %v1386_v15 = vsel %vm1373_vm6, %v3566_v46, %v4210_v53 }
 0x28b   : > { %v1132_v61 = vpop.permute.xlu1 %1131 }
 0x28c   : > { %v1100_v28 = vpop.permute.xlu0 %1099  ;;  %v1500_v27 = vsel %vm1472_vm9, %v1467_v5, %v1132_v61 }
 0x28d   : > { %v1484_v34 = vsel %vm1472_vm9, %v1451_v37, %v1100_v28 }
 0x28f   : > { %v1231_v3 = vpop.permute.xlu1 %1230 }
 0x290   : > { %v1532_v23 = vsel %vm1505_vm10, %v1499_v12, %v1231_v3  ;;  %v1199_v25 = vpop.permute.xlu0 %1198 }
 0x291   : > { %v1516_v39 = vsel %vm1505_vm10, %v1483_v59, %v1199_v25  ;;  %2150 = vmatprep.mubr.msk.f32.mxu1 %vm1550_vm11, %v1532_v23 }
 0x292   : > { %2126 = vmatprep.mubr.msk.f32.mxu0 %vm1550_vm11, %v1516_v39 }
 0x293   : > { %v4227_v38 = vpop.permute.xlu1 %834 }
 0x294   : > { %v4229_v51 = vpop.permute.xlu0 %802  ;;  %v1403_v12 = vsel %vm1373_vm6, %v3699_v44, %v4227_v38 }
 0x295   : > { %v1387_v59 = vsel %vm1373_vm6, %v3563_v33, %v4229_v51 }
 0x297   : > { %v934_v7 = vpop.permute.xlu1 %933 }
 0x298   : > { %v902_v0 = vpop.permute.xlu0 %901  ;;  %v1435_v2 = vsel %vm1406_vm7, %v1402_v13, %v934_v7 }
 0x299   : > { %v1419_v61 = vsel %vm1406_vm7, %v1386_v15, %v902_v0 }
 0x29b   : > { %v1233_v29 = vpop.permute.xlu1 %1232 }
 0x29c   : > { %v1533_v58 = vsel %vm1505_vm10, %v1500_v27, %v1233_v29  ;;  %v1201_v4 = vpop.permute.xlu0 %1200 }
 0x29d   : > { %v1517_v45 = vsel %vm1505_vm10, %v1484_v34, %v1201_v4  ;;  %2151 = vmatmul.mubr.msk.f32.gmra.mrb[10].mxu1 %vm1550_vm11, %v1533_v58 }
 0x29e   : > { %2127 = vmatmul.mubr.msk.f32.gmra.mrb[10].mxu0 %vm1550_vm11, %v1517_v45 }
 0x29f   : > { %v936_v41 = vpop.permute.xlu1 %935 }
 0x2a0   : > { %v904_v36 = vpop.permute.xlu0 %903  ;;  %v1436_v23 = vsel %vm1406_vm7, %v1403_v12, %v936_v41 }
 0x2a1   : > { %v1420_v25 = vsel %vm1406_vm7, %v1387_v59, %v904_v36 }
 0x2a3   : > { %v1032_v18 = vpop.permute.xlu1 %1031 }
 0x2a4   : > { %v1000_v9 = vpop.permute.xlu0 %999  ;;  %v1468_v43 = vsel %vm1439_vm8, %v1435_v2, %v1032_v18 }
 0x2a5   : > { %v1452_v28 = vsel %vm1439_vm8, %v1419_v61, %v1000_v9 }
 0x2a7   : > { %v1034_v10 = vpop.permute.xlu1 %1033 }
 0x2a8   : > { %v1002_v20 = vpop.permute.xlu0 %1001  ;;  %v1469_v39 = vsel %vm1439_vm8, %v1436_v23, %v1034_v10 }
 0x2a9   : > { %v1453_v7 = vsel %vm1439_vm8, %v1420_v25, %v1002_v20 }
 0x2ab   : > { %v1134_v24 = vpop.permute.xlu1 %1133 }
 0x2ac   : > { %v1102_v40 = vpop.permute.xlu0 %1101  ;;  %v2137_v55 = vpop.f32.mrb[0].mxu1  ;;  %v1501_v22 = vsel %vm1472_vm9, %v1468_v43, %v1134_v24 }
 0x2ad   : > { %v2113_v42 = vpop.f32.mrb[0].mxu0  ;;  %v1803_v62 = vadd.f32 %v2137_v55, %v4246_v63  ;;  %v1797_v57 = vpop.f32.mrb[1].mxu1  ;;  %v1485_v30 = vsel %vm1472_vm9, %v1452_v28, %v1102_v40 }
 0x2ae   : > { %v1723_v17 = vadd.f32 %v2113_v42, %v4246_v63  ;;  %v1717_v49 = vpop.f32.mrb[1].mxu0  ;;  %v1798_v47 = vadd.f32 %v4246_v63, %v1797_v57 }
 0x2af   : > { %1893 = vst.msk [vmem:[%s4251_s24 + $0x88] sm:$0xff] %vm1307_vm4, %v1803_v62  ;;  %v1718_v35 = vadd.f32 %v4246_v63, %v1717_v49  ;;  %v837_v50 = vpop.permute.xlu1 %836 }
 0x2b0   : > { %1877 = vst.msk [vmem:[%s4251_s24 + $0x8] sm:$0xff] %vm1307_vm4, %v1723_v17  ;;  %1892 = vst.msk [vmem:[%s4251_s24 + $0x80] sm:$0xff] %vm1307_vm4, %v1798_v47  ;;  %v805_v56 = vpop.permute.xlu0 %804  ;;  %v1404_v24 = vsel %vm1373_vm6, %v3722_v19, %v837_v50 }
 0x2b1   : > { %1876 = vst.msk [vmem:[%s4251_s24] sm:$0xff] %vm1307_vm4, %v1718_v35  ;;  %v1388_v55 = vsel %vm1373_vm6, %v3586_v54, %v805_v56 }
 0x2b3   : > { %v1136_v26 = vpop.permute.xlu1 %1135 }
 0x2b4   : > { %v1104_v1 = vpop.permute.xlu0 %1103  ;;  %v1502_v48 = vsel %vm1472_vm9, %v1469_v39, %v1136_v26 }
 0x2b5   : > { %v1486_v21 = vsel %vm1472_vm9, %v1453_v7, %v1104_v1 }
 0x2b7   : > { %v1235_v14 = vpop.permute.xlu1 %1234 }
 0x2b8   : > { %v1534_v8 = vsel %vm1505_vm10, %v1501_v22, %v1235_v14  ;;  %v1203_v60 = vpop.permute.xlu0 %1202 }
 0x2b9   : > { %v1518_v31 = vsel %vm1505_vm10, %v1485_v30, %v1203_v60  ;;  %2153 = vmatprep.mubr.msk.f32.mxu1 %vm1550_vm11, %v1534_v8 }
 0x2ba   : > { %2129 = vmatprep.mubr.msk.f32.mxu0 %vm1550_vm11, %v1518_v31 }
 0x2bb   : > { %v839_v46 = vpop.permute.xlu1 %838 }
 0x2bc   : > { %v807_v53 = vpop.permute.xlu0 %806  ;;  %v1405_v35 = vsel %vm1373_vm6, %v3719_v52, %v839_v46 }
 0x2bd   : > { %v1389_v54 = vsel %vm1373_vm6, %v3583_v16, %v807_v53 }
 0x2bf   : > { %v938_v11 = vpop.permute.xlu1 %937 }
 0x2c0   : > { %v906_v3 = vpop.permute.xlu0 %905  ;;  %v1437_v42 = vsel %vm1406_vm7, %v1404_v24, %v938_v11 }
 0x2c1   : > { %v1421_v62 = vsel %vm1406_vm7, %v1388_v55, %v906_v3 }
 0x2c3   : > { %v1237_v0 = vpop.permute.xlu1 %1236 }
 0x2c4   : > { %v1535_v44 = vsel %vm1505_vm10, %v1502_v48, %v1237_v0  ;;  %v1205_v38 = vpop.permute.xlu0 %1204 }
 0x2c5   : > { %v1519_v32 = vsel %vm1505_vm10, %v1486_v21, %v1205_v38  ;;  %2154 = vmatmul.mubr.msk.f32.gmra.mrb[12].mxu1 %vm1550_vm11, %v1535_v44 }
 0x2c6   : > { %2130 = vmatmul.mubr.msk.f32.gmra.mrb[12].mxu0 %vm1550_vm11, %v1519_v32 }
 0x2c7   : > { %v940_v33 = vpop.permute.xlu1 %939 }
 0x2c8   : > { %v908_v51 = vpop.permute.xlu0 %907  ;;  %v1438_v56 = vsel %vm1406_vm7, %v1405_v35, %v940_v33 }
 0x2c9   : > { %v1422_v1 = vsel %vm1406_vm7, %v1389_v54, %v908_v51 }
 0x2cb   : > { %v1036_v6 = vpop.permute.xlu1 %1035 }
 0x2cc   : > { %v1004_v5 = vpop.permute.xlu0 %1003  ;;  %v1470_v57 = vsel %vm1439_vm8, %v1437_v42, %v1036_v6 }
 0x2cd   : > { %v1454_v17 = vsel %vm1439_vm8, %v1421_v62, %v1004_v5 }
 0x2cf   : > { %v1038_v37 = vpop.permute.xlu1 %1037 }
 0x2d0   : > { %v1006_v27 = vpop.permute.xlu0 %1005  ;;  %v2140_v29 = vpop.f32.mrb[2].mxu1  ;;  %v1471_v15 = vsel %vm1439_vm8, %v1438_v56, %v1038_v37 }
 0x2d1   : > { %v2116_v34 = vpop.f32.mrb[2].mxu0  ;;  %v1813_v58 = vadd.f32 %v2140_v29, %v4246_v63  ;;  %v1807_v4 = vpop.f32.mrb[3].mxu1  ;;  %v1455_v52 = vsel %vm1439_vm8, %v1422_v1, %v1006_v27 }
 0x2d2   : > { %v1733_v45 = vadd.f32 %v2116_v34, %v4246_v63  ;;  %v1727_v41 = vpop.f32.mrb[3].mxu0  ;;  %v1808_v36 = vadd.f32 %v4246_v63, %v1807_v4 }
 0x2d3   : > { %1895 = vst.msk [vmem:[%s4251_s24 + $0x98] sm:$0xff] %vm1307_vm4, %v1813_v58  ;;  %v1728_v18 = vadd.f32 %v4246_v63, %v1727_v41  ;;  %v1138_v9 = vpop.permute.xlu1 %1137 }
 0x2d4   : > { %1879 = vst.msk [vmem:[%s4251_s24 + $0x18] sm:$0xff] %vm1307_vm4, %v1733_v45  ;;  %1894 = vst.msk [vmem:[%s4251_s24 + $0x90] sm:$0xff] %vm1307_vm4, %v1808_v36  ;;  %v1106_v10 = vpop.permute.xlu0 %1105  ;;  %v1503_v49 = vsel %vm1472_vm9, %v1470_v57, %v1138_v9 }
 0x2d5   : > { %1878 = vst.msk [vmem:[%s4251_s24 + $0x10] sm:$0xff] %vm1307_vm4, %v1728_v18  ;;  %v1487_v19 = vsel %vm1472_vm9, %v1454_v17, %v1106_v10 }
 0x2d7   : > { %v1140_v20 = vpop.permute.xlu1 %1139 }
 0x2d8   : > { %v1108_v40 = vpop.permute.xlu0 %1107  ;;  %v1504_v2 = vsel %vm1472_vm9, %v1471_v15, %v1140_v20 }
 0x2d9   : > { %v1488_v16 = vsel %vm1472_vm9, %v1455_v52, %v1108_v40 }
 0x2db   : > { %v1239_v47 = vpop.permute.xlu1 %1238 }
 0x2dc   : > { %v1536_v50 = vsel %vm1505_vm10, %v1503_v49, %v1239_v47  ;;  %v1207_v26 = vpop.permute.xlu0 %1206 }
 0x2dd   : > { %v1520_v13 = vsel %vm1505_vm10, %v1487_v19, %v1207_v26  ;;  %2156 = vmatprep.mubr.msk.f32.mxu1 %vm1550_vm11, %v1536_v50 }
 0x2de   : > { %2132 = vmatprep.mubr.msk.f32.mxu0 %vm1550_vm11, %v1520_v13 }
 0x2df   : > { %v1241_v61 = vpop.permute.xlu1 %1240 }
 0x2e0   : > { %v1537_v43 = vsel %vm1505_vm10, %v1504_v2, %v1241_v61  ;;  %v1209_v28 = vpop.permute.xlu0 %1208 }
 0x2e1   : > { %v1521_v22 = vsel %vm1505_vm10, %v1488_v16, %v1209_v28  ;;  %2157 = vmatmul.mubr.msk.f32.gmra.mrb[14].mxu1 %vm1550_vm11, %v1537_v43 }
 0x2e2   : > { %2133 = vmatmul.mubr.msk.f32.gmra.mrb[14].mxu0 %vm1550_vm11, %v1521_v22 }
 0x2f8   : > { %v2143_v14 = vpop.f32.mrb[4].mxu1 }
 0x2f9   : > { %v2119_v30 = vpop.f32.mrb[4].mxu0  ;;  %v1823_v8 = vadd.f32 %v2143_v14, %v4246_v63  ;;  %v1817_v60 = vpop.f32.mrb[5].mxu1 }
 0x2fa   : > { %v1743_v31 = vadd.f32 %v2119_v30, %v4246_v63  ;;  %v1737_v46 = vpop.f32.mrb[5].mxu0  ;;  %v1818_v53 = vadd.f32 %v4246_v63, %v1817_v60 }
 0x2fb   : > { %1897 = vst.msk [vmem:[%s4251_s24 + $0xa8] sm:$0xff] %vm1307_vm4, %v1823_v8  ;;  %v1738_v11 = vadd.f32 %v4246_v63, %v1737_v46 }
 0x2fc   : > { %1881 = vst.msk [vmem:[%s4251_s24 + $0x28] sm:$0xff] %vm1307_vm4, %v1743_v31  ;;  %1896 = vst.msk [vmem:[%s4251_s24 + $0xa0] sm:$0xff] %vm1307_vm4, %v1818_v53 }
 0x2fd   : > { %1880 = vst.msk [vmem:[%s4251_s24 + $0x20] sm:$0xff] %vm1307_vm4, %v1738_v11 }
 0x320   : > { %v2146_v12 = vpop.f32.mrb[6].mxu1 }
 0x321   : > { %v2122_v3 = vpop.f32.mrb[6].mxu0  ;;  %v1833_v59 = vadd.f32 %v2146_v12, %v4246_v63  ;;  %v1827_v23 = vpop.f32.mrb[7].mxu1 }
 0x322   : > { %v1753_v25 = vadd.f32 %v2122_v3, %v4246_v63  ;;  %v1747_v39 = vpop.f32.mrb[7].mxu0  ;;  %v1828_v7 = vadd.f32 %v4246_v63, %v1827_v23 }
 0x323   : > { %1899 = vst.msk [vmem:[%s4251_s24 + $0xb8] sm:$0xff] %vm1307_vm4, %v1833_v59  ;;  %v1748_v48 = vadd.f32 %v4246_v63, %v1747_v39 }
 0x324   : > { %1883 = vst.msk [vmem:[%s4251_s24 + $0x38] sm:$0xff] %vm1307_vm4, %v1753_v25  ;;  %1898 = vst.msk [vmem:[%s4251_s24 + $0xb0] sm:$0xff] %vm1307_vm4, %v1828_v7 }
 0x325   : > { %1882 = vst.msk [vmem:[%s4251_s24 + $0x30] sm:$0xff] %vm1307_vm4, %v1748_v48 }
 0x348   : > { %v2149_v0 = vpop.f32.mrb[8].mxu1 }
 0x349   : > { %v2125_v21 = vpop.f32.mrb[8].mxu0  ;;  %v1843_v44 = vadd.f32 %v2149_v0, %v4246_v63  ;;  %v1837_v38 = vpop.f32.mrb[9].mxu1 }
 0x34a   : > { %v1763_v32 = vadd.f32 %v2125_v21, %v4246_v63  ;;  %v1757_v33 = vpop.f32.mrb[9].mxu0  ;;  %v1838_v51 = vadd.f32 %v4246_v63, %v1837_v38 }
 0x34b   : > { %1901 = vst.msk [vmem:[%s4251_s24 + $0xc8] sm:$0xff] %vm1307_vm4, %v1843_v44  ;;  %v1758_v6 = vadd.f32 %v4246_v63, %v1757_v33 }
 0x34c   : > { %1885 = vst.msk [vmem:[%s4251_s24 + $0x48] sm:$0xff] %vm1307_vm4, %v1763_v32  ;;  %1900 = vst.msk [vmem:[%s4251_s24 + $0xc0] sm:$0xff] %vm1307_vm4, %v1838_v51 }
 0x34d   : > { %1884 = vst.msk [vmem:[%s4251_s24 + $0x40] sm:$0xff] %vm1307_vm4, %v1758_v6 }
 0x370   : > { %v2152_v5 = vpop.f32.mrb[10].mxu1 }
 0x371   : > { %v2128_v37 = vpop.f32.mrb[10].mxu0  ;;  %v1853_v27 = vadd.f32 %v2152_v5, %v4246_v63  ;;  %v1847_v29 = vpop.f32.mrb[11].mxu1 }
 0x372   : > { %v1773_v34 = vadd.f32 %v2128_v37, %v4246_v63  ;;  %v1767_v58 = vpop.f32.mrb[11].mxu0  ;;  %v1848_v4 = vadd.f32 %v4246_v63, %v1847_v29 }
 0x373   : > { %1903 = vst.msk [vmem:[%s4251_s24 + $0xd8] sm:$0xff] %vm1307_vm4, %v1853_v27  ;;  %v1768_v45 = vadd.f32 %v4246_v63, %v1767_v58 }
 0x374   : > { %1887 = vst.msk [vmem:[%s4251_s24 + $0x58] sm:$0xff] %vm1307_vm4, %v1773_v34  ;;  %1902 = vst.msk [vmem:[%s4251_s24 + $0xd0] sm:$0xff] %vm1307_vm4, %v1848_v4 }
 0x375   : > { %1886 = vst.msk [vmem:[%s4251_s24 + $0x50] sm:$0xff] %vm1307_vm4, %v1768_v45 }
 0x398   : > { %v2155_v41 = vpop.f32.mrb[12].mxu1 }
 0x399   : > { %v2131_v36 = vpop.f32.mrb[12].mxu0  ;;  %v1863_v18 = vadd.f32 %v2155_v41, %v4246_v63  ;;  %v1857_v9 = vpop.f32.mrb[13].mxu1 }
 0x39a   : > { %v1783_v10 = vadd.f32 %v2131_v36, %v4246_v63  ;;  %v1777_v20 = vpop.f32.mrb[13].mxu0  ;;  %v1858_v24 = vadd.f32 %v4246_v63, %v1857_v9 }
 0x39b   : > { %1905 = vst.msk [vmem:[%s4251_s24 + $0xe8] sm:$0xff] %vm1307_vm4, %v1863_v18  ;;  %v1778_v40 = vadd.f32 %v4246_v63, %v1777_v20 }
 0x39c   : > { %1889 = vst.msk [vmem:[%s4251_s24 + $0x68] sm:$0xff] %vm1307_vm4, %v1783_v10  ;;  %1904 = vst.msk [vmem:[%s4251_s24 + $0xe0] sm:$0xff] %vm1307_vm4, %v1858_v24 }
 0x39d   : > { %1888 = vst.msk [vmem:[%s4251_s24 + $0x60] sm:$0xff] %vm1307_vm4, %v1778_v40 }
 0x3b4   : > { %v2158_v55 = vpop.f32.mrb[14].mxu1 }
 0x3b5   : > { %v2134_v42 = vpop.f32.mrb[14].mxu0  ;;  %v1873_v62 = vadd.f32 %v2158_v55, %v4246_v63  ;;  %v1867_v57 = vpop.f32.mrb[15].mxu1 }
 0x3b6   : > { %v1793_v17 = vadd.f32 %v2134_v42, %v4246_v63  ;;  %v1787_v49 = vpop.f32.mrb[15].mxu0  ;;  %v1868_v47 = vadd.f32 %v4246_v63, %v1867_v57 }
 0x3b7   : > { %1907 = vst.msk [vmem:[%s4251_s24 + $0xf8] sm:$0xff] %vm1307_vm4, %v1873_v62  ;;  %v1788_v35 = vadd.f32 %v4246_v63, %v1787_v49 }
 0x3b8   : > { %1891 = vst.msk [vmem:[%s4251_s24 + $0x78] sm:$0xff] %vm1307_vm4, %v1793_v17  ;;  %1906 = vst.msk [vmem:[%s4251_s24 + $0xf0] sm:$0xff] %vm1307_vm4, %v1868_v47 }
 0x3b9   : > { %1890 = vst.msk [vmem:[%s4251_s24 + $0x70] sm:$0xff] %vm1307_vm4, %v1788_v35 }
 0x3ba   : > { %2371 = shalt.err (!%p2368_p1)
}
 0x3bb   : > { %s2372_s8 = scalar_lea.hbm %s4402_s4, 4096  ;;  %s2376_s22 = scalar_lea.hbm %s4461_s3, 8192 }
 0x3bc   : > { %p2373_p13 = scmp.ne.s32.totalorder %s4402_s4, %s2372_s8  ;;  %p2377_p4 = scmp.lt.u32.totalorder %s4402_s4, %s4461_s3 }
 0x3bd   : > { %p2378_p5 = scmp.lt.u32.totalorder %s2376_s22, %s2372_s8  ;;  %p2380_p11 = scmp.lt.u32.totalorder %s2372_s8, %s4402_s4 }
 0x3be   : > { %p2374_p6 = pnand %p2373_p13, %p4757_p0 }
 0x3bf   : > { %p2379_p8 = por %p2378_p5, %p2377_p4 }
 0x3c0   : > { %p2375_p10 = pneg %p2374_p6 }
 0x3c1   : > { %p2381_p2 = por %p2380_p11, %p2379_p8 }
 0x3c3   : > { %p2382_p3 = pnand %p2381_p2, %p2375_p10 }
 0x3c5   : > { %2385 = shalt.err (!%p2382_p3)
}
 0x3c6   : > { %s2444_s24 = smov 128  }
 0x3c7   : > { %2186 = dma.vmem_to_hbm [thread:$0]  (%p4757_p0), %s4407_s17, 4096, %s4402_s4, %s1909_s16, %s2444_s24, %s2444_s24, %s2436_s20  }
 0x3c8 PF: > { %s1937_s11 = sand.u32 1, %s2416_s12   ;;  %p4758_p7 = scmp.ne.s32.totalorder %s4570_s19, 0 }
 0x3c9   : > { %p4759_p9 = scmp.ge.s32.totalorder %s2428_s15, 2  ;;  %s1938_s26 = scalar_lea.sflag [#allocation4], %s1937_s11 }
 0x3cb   : > { %p2200_p12 = pnand %p4759_p9, %p4758_p7 }
 0x3cd   : > { %2411 = dma.done.wait (!%p2200_p12), %s1938_s26, 4096  }
 0x3ce   : > { %2413 = vsyncadd (!%p2200_p12), %s1938_s26, 4294963200  ;;  %p17_p1 = scmp.ge.s32.totalorder %s2579_s5, 4   ;;  %s4760_s12 = smov %s2420_s13 }
 0x3cf   : > { %s4761_s13 = smov %s2424_s14  ;;  %s4762_s14 = smov %s2595_s10 }
 0x3d0   : > { %s4763_s15 = smov %s2579_s5  ;;  %19 = sbr.rel (!%p17_p1) target bundleno = 6 (0x6), region = 85 }
 0x3d7   :  { %1943 = vsyncpa [#allocation3], 1 }
 0x3d8   :  { %1945 = vsyncpa [#allocation3 + $0x1], 1 }
 0x3d9   :  { %1946 = vsyncpa [#allocation6], 1 }
 0x3da   :  { %1947 = vsyncpa [#allocation4], 1 }
 0x3db   :  { %1949 = vsyncpa [#allocation4 + $0x1], 1 }

</bundles_post_ra>
